<compile_context>
chip_gen: v5e
topology: v5e:2x2
jax: 0.10.0
libtpu: 0.0.40
codegen_flags: <defaults>
</compile_context>

<pallas_src>
import math
from functools import partial

import jax
import jax.numpy as jnp
from jax.experimental import pallas as pl
from jax.experimental.pallas import tpu as pltpu


# ----------------------------- fused Pallas kernel -----------------------------

def fused_transformer_kernel(x_ref, w_ref, v_ref, o_ref, *, L, D, d_hid):
    """Positional-encoding add + all encoder layers + decoder MLP, fully VMEM-resident.

    x_ref : (B, S, D) f32   activations (features zero-padded to D on the host)
    w_ref : (WROWS, 16D) bf16 weight-matrix slab (row-packed, see pack_params)
    v_ref : (VROWS, 16D) f32  vector slab: pe rows, per-layer bias/LN rows, decoder rows
    o_ref : (B, S) f32        sigmoid output
    """
    B, S, _ = x_ref.shape
    M = B * S
    per = 3 * D + d_hid            # weight-slab rows per encoder layer

    # Positional encoding: pe rows hold sin/cos in the last two feature columns (zeros
    # elsewhere), so this add == the torch concat (src was zero-padded to D on the host).
    pe = v_ref[0:S, 0:D]                                   # (S, D) f32
    x = x_ref[...] + pe[None, :, :]                        # (B, S, D)
    x2 = x.reshape(M, D)                                   # fold batch into matmul M

    def layer_norm(y, w, b):
        mu = jnp.mean(y, axis=-1, keepdims=True)
        var = jnp.mean((y - mu) ** 2, axis=-1, keepdims=True)
        return (y - mu) * jax.lax.rsqrt(var + 1e-5) * w + b

    for l in range(L):                                     # static unroll (L is small)
        wb = l * per                                       # weight slab row base
        vb = S + 8 * l                                     # vector slab row base
        wqkv = w_ref[wb:wb + D, 0:3 * D]                   # (D, 3D)   bf16
        wo = w_ref[wb + D:wb + 2 * D, 0:D]                 # (D, D)    bf16
        w1 = w_ref[wb + 2 * D:wb + 3 * D, 0:d_hid]         # (D, d_hid) bf16
        w2 = w_ref[wb + 3 * D:wb + 3 * D + d_hid, 0:D]     # (d_hid, D) bf16
        bqkv = v_ref[vb + 0:vb + 1, 0:3 * D]               # (1, 3D)   f32
        bo = v_ref[vb + 1:vb + 2, 0:D]
        b1 = v_ref[vb + 2:vb + 3, 0:d_hid]
        b2 = v_ref[vb + 3:vb + 4, 0:D]
        ln1w = v_ref[vb + 4:vb + 5, 0:D]
        ln1b = v_ref[vb + 5:vb + 6, 0:D]
        ln2w = v_ref[vb + 6:vb + 7, 0:D]
        ln2b = v_ref[vb + 7:vb + 8, 0:D]

        # ---- self-attention: nhead == D, head_dim == 1, scale == 1 ----
        qkv = jnp.dot(x2.astype(jnp.bfloat16), wqkv,
                      preferred_element_type=jnp.float32) + bqkv
        q = qkv[:, 0 * D:1 * D].reshape(B, S, D)
        k = qkv[:, 1 * D:2 * D].reshape(B, S, D)
        v = qkv[:, 2 * D:3 * D].reshape(B, S, D)
        # scores[b,i,j,h] = q[b,i,h] * k[b,j,h]; heads stay lane-dense on the last axis,
        # softmax reduces over the key axis j (sublanes) — never over a width-8 lane axis.
        scores = q[:, :, None, :] * k[:, None, :, :]       # (B, S, S, D) f32
        scores = scores - jnp.max(scores, axis=2, keepdims=True)
        p = jnp.exp(scores)
        p = p * pl.reciprocal(jnp.sum(p, axis=2, keepdims=True), approx=True)
        attn = jnp.sum(p * v[:, None, :, :], axis=2).reshape(M, D)
        a2 = jnp.dot(attn.astype(jnp.bfloat16), wo,
                     preferred_element_type=jnp.float32) + bo

        # ---- residual + LayerNorm1 (post-norm), f32 ----
        y = layer_norm(x2 + a2, ln1w, ln1b)

        # ---- feed-forward (ReLU) ----
        h = jnp.dot(y.astype(jnp.bfloat16), w1,
                    preferred_element_type=jnp.float32) + b1
        h = jnp.maximum(h, 0.0)
        f = jnp.dot(h.astype(jnp.bfloat16), w2,
                    preferred_element_type=jnp.float32) + b2

        # ---- residual + LayerNorm2 ----
        x2 = layer_norm(y + f, ln2w, ln2b)

    # ---- decoder: Linear(D, 16D) -> ReLU -> Linear(16D, 1) -> Sigmoid ----
    dw1 = w_ref[L * per:L * per + D, 0:16 * D]             # (D, 16D) bf16
    dr = S + 8 * L                                         # decoder rows in vector slab
    db1 = v_ref[dr + 0:dr + 1, 0:16 * D]                   # (1, 16D) f32
    dw2 = v_ref[dr + 1:dr + 2, 0:16 * D]                   # (1, 16D) f32 (lane reduction)
    db2 = v_ref[dr + 2:dr + 3, 0:1]                        # (1, 1)

    h = jnp.dot(x2.astype(jnp.bfloat16), dw1,
                preferred_element_type=jnp.float32) + db1
    h = jnp.maximum(h, 0.0).reshape(B, S, 16 * D)
    # Second linear has out_features == 1: lane reduction instead of an N=1 matmul; the result
    # is written once as a lane-dense (B, S) slab (no width-1 masked stores).
    logits = jnp.sum(h * dw2[None, :, :], axis=-1) + db2   # (B, S)
    # Sigmoid via the (otherwise idle) EUP approx reciprocal; clamp keeps the exact [0,1] range.
    sig = pl.reciprocal(1.0 + jnp.exp(-logits), approx=True)
    o_ref[...] = jnp.clip(sig, 0.0, 1.0)


# ----------------------------- wrapper -----------------------------

def transformer_forward(src, w_slab, v_slab, meta, target_length):
    """src: (B, S, d_model) f32 -> (B, min(S, target_length)) f32."""
    B, S, d_model = src.shape
    D, d_hid, L = meta["D"], meta["d_hid"], meta["L"]
    # The pe rows / vector slab are baked for a fixed sequence length: fail loudly otherwise.
    assert S == meta["S"], "param slabs were packed for a different sequence length"
    assert d_model == meta["d_model"], "param slabs were packed for a different d_model"

    # Host-side layout prep only (zero-pad features to D); everything else is fused.
    x_pad = jnp.pad(src.astype(jnp.float32), ((0, 0), (0, 0), (0, D - d_model)))

    kernel = partial(fused_transformer_kernel, L=L, D=D, d_hid=d_hid)
    vmem = pl.BlockSpec(memory_space=pltpu.MemorySpace.VMEM)

    # No grid, no pipeline: one invocation, whole arrays resident in VMEM (<1 MiB total),
    # three input DMAs (activations + two packed slabs) and one output DMA.
    y = pl.pallas_call(
        kernel,
        out_shape=jax.ShapeDtypeStruct((B, S), jnp.float32),
        in_specs=[vmem, vmem, vmem],
        out_specs=vmem,
    )(x_pad, w_slab, v_slab)

    # torch-style clamped slice: output[:, -target_length:, 0]
    return y[:, -target_length:]


# ----------------------------- parameters -----------------------------

def init_params(key, D, d_hid, nlayers):
    """PyTorch-convention params: nn.Linear weights are [out_features, in_features]."""
    def nrm(k, shape, scale=0.1):
        return (scale * jax.random.normal(k, shape)).astype(jnp.float32)

    layers = []
    for _ in range(nlayers):
        key, *ks = jax.random.split(key, 9)
        layers.append({
            "wqkv": nrm(ks[0], (3 * D, D)), "bqkv": nrm(ks[1], (3 * D,)),
            "wo":   nrm(ks[2], (D, D)),     "bo":   nrm(ks[3], (D,)),
            "ln1w": jnp.ones((D,), jnp.float32), "ln1b": jnp.zeros((D,), jnp.float32),
            "w1":   nrm(ks[4], (d_hid, D)), "b1":   nrm(ks[5], (d_hid,)),
            "w2":   nrm(ks[6], (D, d_hid)), "b2":   nrm(ks[7], (D,)),
            "ln2w": jnp.ones((D,), jnp.float32), "ln2b": jnp.zeros((D,), jnp.float32),
        })
    key, k1, k2, k3, k4 = jax.random.split(key, 5)
    decoder = {
        "w1": nrm(k1, (16 * D, D)), "b1": nrm(k2, (16 * D,)),
        "w2": nrm(k3, (1, 16 * D)), "b2": nrm(k4, (1,)),
    }
    return {"layers": layers, "decoder": decoder}


def pack_params(params, d_model, S, D, d_hid):
    """One-time host prep: pack ALL parameters into two contiguous slabs.

    w_slab (bf16, rows x 16D): per layer (row stride 3D+d_hid):
        [wqkv^T | wo^T | w1^T | w2^T] stacked along rows, then decoder w1^T.
        All matrices are pre-transposed to [in_features, out_features].
    v_slab (f32, rows x 16D): S rows of baked sin/cos positional features, then 8 rows per
        layer (bqkv, bo, b1, b2, ln1w, ln1b, ln2w, ln2b), then 3 decoder rows (db1, dw2, db2).
    """
    Ls = params["layers"]
    L = len(Ls)
    WCOLS = 16 * D
    per = 3 * D + d_hid

    wrows = L * per + D
    wrows = -(-wrows // 16) * 16                  # bf16 sublane-tile alignment
    w = jnp.zeros((wrows, WCOLS), jnp.float32)

    def put(slab, r, mat):                        # mat already [in, out]
        rr, cc = mat.shape
        return slab.at[r:r + rr, 0:cc].set(mat)

    for l, lp in enumerate(Ls):
        b = l * per
        w = put(w, b + 0 * D, lp["wqkv"].T)                  # (D, 3D)
        w = put(w, b + 1 * D, lp["wo"].T)                    # (D, D)
        w = put(w, b + 2 * D, lp["w1"].T)                    # (D, d_hid)
        w = put(w, b + 3 * D, lp["w2"].T)                    # (d_hid, D)
    dec = params["decoder"]
    w = put(w, L * per, dec["w1"].T)                         # (D, 16D)
    w_slab = w.astype(jnp.bfloat16)

    vrows = S + 8 * L + 3
    vrows = -(-vrows // 8) * 8
    v = jnp.zeros((vrows, WCOLS), jnp.float32)
    div = math.exp(-math.log(10000.0) / d_model)
    pos = jnp.arange(S, dtype=jnp.float32) * div
    v = v.at[0:S, d_model].set(jnp.sin(pos))
    v = v.at[0:S, d_model + 1].set(jnp.cos(pos))
    for l, lp in enumerate(Ls):
        b = S + 8 * l
        v = v.at[b + 0, 0:3 * D].set(lp["bqkv"])
        v = v.at[b + 1, 0:D].set(lp["bo"])
        v = v.at[b + 2, 0:d_hid].set(lp["b1"])
        v = v.at[b + 3, 0:D].set(lp["b2"])
        v = v.at[b + 4, 0:D].set(lp["ln1w"])
        v = v.at[b + 5, 0:D].set(lp["ln1b"])
        v = v.at[b + 6, 0:D].set(lp["ln2w"])
        v = v.at[b + 7, 0:D].set(lp["ln2b"])
    d = S + 8 * L
    v = v.at[d + 0, 0:16 * D].set(dec["b1"])
    v = v.at[d + 1, 0:16 * D].set(dec["w2"][0])
    v = v.at[d + 2, 0:1].set(dec["b2"])

    meta = {"S": S, "D": D, "d_hid": d_hid, "L": L, "d_model": d_model}
    return w_slab, v, meta


# ----------------------------- main -----------------------------

if __name__ == "__main__":
    d_model, nhead, d_hid, nlayers = 30, 2, 64, 2   # nhead arg is ignored by the module itself
    target_length = 96
    B, S = 2, 8
    D = d_model + 2                                 # 32

    key = jax.random.PRNGKey(0)
    kx, kp = jax.random.split(key)
    src = jax.random.normal(kx, (B, S, d_model), dtype=jnp.float32)
    params = init_params(kp, D, d_hid, nlayers)
    w_slab, v_slab, meta = pack_params(params, d_model, S, D, d_hid)

    fwd = jax.jit(lambda s: transformer_forward(s, w_slab, v_slab, meta, target_length))
    out = jax.block_until_ready(fwd(src))

    assert out.shape == (B, min(S, target_length)), out.shape
    assert bool(jnp.all(jnp.isfinite(out)))
    assert bool(jnp.all((out >= 0.0) & (out <= 1.0)))   # sigmoid output range
    print("KERNEL_OK")
</pallas_src>

<mosaic_0001>
module attributes {stable_mosaic.version = 11 : i64} {
  func.func @fused_transformer_kernel(%arg0: memref<2x8x32xf32, #tpu.memory_space<vmem>>, %arg1: memref<352x512xbf16, #tpu.memory_space<vmem>>, %arg2: memref<32x512xf32, #tpu.memory_space<vmem>>, %arg3: memref<2x8xf32, #tpu.memory_space<vmem>>) attributes {dimension_semantics = [], scalar_prefetch = 0 : i64, scratch_operands = 0 : i64, tpu.core_type = #tpu.core_type<tc>} {
    %c0 = arith.constant 0 : index
    %c0_0 = arith.constant 0 : index
    %0 = vector.load %arg2[%c0, %c0_0] : memref<32x512xf32, #tpu.memory_space<vmem>>, vector<8x32xf32>
    %c0_1 = arith.constant 0 : index
    %c0_2 = arith.constant 0 : index
    %c0_3 = arith.constant 0 : index
    %1 = vector.load %arg0[%c0_1, %c0_2, %c0_3] : memref<2x8x32xf32, #tpu.memory_space<vmem>>, vector<2x8x32xf32>
    %2 = vector.shape_cast %0 : vector<8x32xf32> to vector<1x8x32xf32>
    %3 = vector.broadcast %2 : vector<1x8x32xf32> to vector<2x8x32xf32>
    %4 = arith.addf %1, %3 : vector<2x8x32xf32>
    %5 = vector.shape_cast %4 : vector<2x8x32xf32> to vector<16x32xf32>
    %c0_4 = arith.constant 0 : index
    %c0_5 = arith.constant 0 : index
    %6 = vector.load %arg1[%c0_4, %c0_5] : memref<352x512xbf16, #tpu.memory_space<vmem>>, vector<32x96xbf16>
    %c32 = arith.constant 32 : index
    %c0_6 = arith.constant 0 : index
    %7 = vector.load %arg1[%c32, %c0_6] : memref<352x512xbf16, #tpu.memory_space<vmem>>, vector<32x32xbf16>
    %c64 = arith.constant 64 : index
    %c0_7 = arith.constant 0 : index
    %8 = vector.load %arg1[%c64, %c0_7] : memref<352x512xbf16, #tpu.memory_space<vmem>>, vector<32x64xbf16>
    %c96 = arith.constant 96 : index
    %c0_8 = arith.constant 0 : index
    %9 = vector.load %arg1[%c96, %c0_8] : memref<352x512xbf16, #tpu.memory_space<vmem>>, vector<64x32xbf16>
    %c8 = arith.constant 8 : index
    %c0_9 = arith.constant 0 : index
    %10 = vector.load %arg2[%c8, %c0_9] : memref<32x512xf32, #tpu.memory_space<vmem>>, vector<1x96xf32>
    %c9 = arith.constant 9 : index
    %c0_10 = arith.constant 0 : index
    %11 = vector.load %arg2[%c9, %c0_10] : memref<32x512xf32, #tpu.memory_space<vmem>>, vector<1x32xf32>
    %c10 = arith.constant 10 : index
    %c0_11 = arith.constant 0 : index
    %12 = vector.load %arg2[%c10, %c0_11] : memref<32x512xf32, #tpu.memory_space<vmem>>, vector<1x64xf32>
    %c11 = arith.constant 11 : index
    %c0_12 = arith.constant 0 : index
    %13 = vector.load %arg2[%c11, %c0_12] : memref<32x512xf32, #tpu.memory_space<vmem>>, vector<1x32xf32>
    %c12 = arith.constant 12 : index
    %c0_13 = arith.constant 0 : index
    %14 = vector.load %arg2[%c12, %c0_13] : memref<32x512xf32, #tpu.memory_space<vmem>>, vector<1x32xf32>
    %c13 = arith.constant 13 : index
    %c0_14 = arith.constant 0 : index
    %15 = vector.load %arg2[%c13, %c0_14] : memref<32x512xf32, #tpu.memory_space<vmem>>, vector<1x32xf32>
    %c14 = arith.constant 14 : index
    %c0_15 = arith.constant 0 : index
    %16 = vector.load %arg2[%c14, %c0_15] : memref<32x512xf32, #tpu.memory_space<vmem>>, vector<1x32xf32>
    %c15 = arith.constant 15 : index
    %c0_16 = arith.constant 0 : index
    %17 = vector.load %arg2[%c15, %c0_16] : memref<32x512xf32, #tpu.memory_space<vmem>>, vector<1x32xf32>
    %18 = arith.truncf %5 : vector<16x32xf32> to vector<16x32xbf16>
    %cst = arith.constant dense<0.000000e+00> : vector<16x96xf32>
    %19 = tpu.matmul %18, %6, %cst {dimension_numbers = #tpu.dot_dimension_numbers<[1], [0], [0], [1], [0, 0, 1, 1], [], []>} : vector<16x32xbf16>, vector<32x96xbf16>, vector<16x96xf32> -> vector<16x96xf32>
    %20 = vector.broadcast %10 : vector<1x96xf32> to vector<16x96xf32>
    %21 = arith.addf %19, %20 : vector<16x96xf32>
    %22 = vector.extract_strided_slice %21 {offsets = [0, 0], sizes = [16, 32], strides = [1, 1]} : vector<16x96xf32> to vector<16x32xf32>
    %23 = vector.shape_cast %22 : vector<16x32xf32> to vector<2x8x32xf32>
    %24 = vector.extract_strided_slice %21 {offsets = [0, 32], sizes = [16, 32], strides = [1, 1]} : vector<16x96xf32> to vector<16x32xf32>
    %25 = vector.shape_cast %24 : vector<16x32xf32> to vector<2x8x32xf32>
    %26 = vector.extract_strided_slice %21 {offsets = [0, 64], sizes = [16, 32], strides = [1, 1]} : vector<16x96xf32> to vector<16x32xf32>
    %27 = vector.shape_cast %26 : vector<16x32xf32> to vector<2x8x32xf32>
    %28 = vector.shape_cast %23 : vector<2x8x32xf32> to vector<2x8x1x32xf32>
    %29 = vector.shape_cast %25 : vector<2x8x32xf32> to vector<2x1x8x32xf32>
    %30 = vector.broadcast %28 : vector<2x8x1x32xf32> to vector<2x8x8x32xf32>
    %31 = vector.broadcast %29 : vector<2x1x8x32xf32> to vector<2x8x8x32xf32>
    %32 = arith.mulf %30, %31 : vector<2x8x8x32xf32>
    %cst_17 = arith.constant dense<0xFF800000> : vector<2x8x32xf32>
    %33 = vector.multi_reduction <maximumf>, %32, %cst_17 [2] : vector<2x8x8x32xf32> to vector<2x8x32xf32>
    %34 = vector.shape_cast %33 : vector<2x8x32xf32> to vector<2x8x1x32xf32>
    %35 = vector.broadcast %34 : vector<2x8x1x32xf32> to vector<2x8x8x32xf32>
    %36 = arith.subf %32, %35 : vector<2x8x8x32xf32>
    %37 = math.exp %36 : vector<2x8x8x32xf32>
    %cst_18 = arith.constant dense<0.000000e+00> : vector<2x8x32xf32>
    %38 = vector.multi_reduction <add>, %37, %cst_18 [2] : vector<2x8x8x32xf32> to vector<2x8x32xf32>
    %39 = vector.shape_cast %38 : vector<2x8x32xf32> to vector<2x8x1x32xf32>
    %40 = tpu.reciprocal %39 {approx = true} : vector<2x8x1x32xf32> -> vector<2x8x1x32xf32>
    %41 = vector.broadcast %40 : vector<2x8x1x32xf32> to vector<2x8x8x32xf32>
    %42 = arith.mulf %37, %41 : vector<2x8x8x32xf32>
    %43 = vector.shape_cast %27 : vector<2x8x32xf32> to vector<2x1x8x32xf32>
    %44 = vector.broadcast %43 : vector<2x1x8x32xf32> to vector<2x8x8x32xf32>
    %45 = arith.mulf %42, %44 : vector<2x8x8x32xf32>
    %cst_19 = arith.constant dense<0.000000e+00> : vector<2x8x32xf32>
    %46 = vector.multi_reduction <add>, %45, %cst_19 [2] : vector<2x8x8x32xf32> to vector<2x8x32xf32>
    %47 = vector.shape_cast %46 : vector<2x8x32xf32> to vector<16x32xf32>
    %48 = arith.truncf %47 : vector<16x32xf32> to vector<16x32xbf16>
    %cst_20 = arith.constant dense<0.000000e+00> : vector<16x32xf32>
    %49 = tpu.matmul %48, %7, %cst_20 {dimension_numbers = #tpu.dot_dimension_numbers<[1], [0], [0], [1], [0, 0, 1, 1], [], []>} : vector<16x32xbf16>, vector<32x32xbf16>, vector<16x32xf32> -> vector<16x32xf32>
    %50 = vector.broadcast %11 : vector<1x32xf32> to vector<16x32xf32>
    %51 = arith.addf %49, %50 : vector<16x32xf32>
    %52 = arith.addf %5, %51 : vector<16x32xf32>
    %cst_21 = arith.constant dense<0.000000e+00> : vector<16xf32>
    %53 = vector.multi_reduction <add>, %52, %cst_21 [1] : vector<16x32xf32> to vector<16xf32>
    %54 = vector.shape_cast %53 : vector<16xf32> to vector<16x1xf32>
    %cst_22 = arith.constant 3.200000e+01 : f32
    %55 = vector.broadcast %cst_22 : f32 to vector<16x1xf32>
    %56 = arith.divf %54, %55 : vector<16x1xf32>
    %57 = vector.broadcast %56 : vector<16x1xf32> to vector<16x32xf32>
    %58 = arith.subf %52, %57 : vector<16x32xf32>
    %59 = arith.mulf %58, %58 : vector<16x32xf32>
    %cst_23 = arith.constant dense<0.000000e+00> : vector<16xf32>
    %60 = vector.multi_reduction <add>, %59, %cst_23 [1] : vector<16x32xf32> to vector<16xf32>
    %61 = vector.shape_cast %60 : vector<16xf32> to vector<16x1xf32>
    %cst_24 = arith.constant 3.200000e+01 : f32
    %62 = vector.broadcast %cst_24 : f32 to vector<16x1xf32>
    %63 = arith.divf %61, %62 : vector<16x1xf32>
    %64 = vector.broadcast %56 : vector<16x1xf32> to vector<16x32xf32>
    %65 = arith.subf %52, %64 : vector<16x32xf32>
    %cst_25 = arith.constant 9.99999974E-6 : f32
    %66 = vector.broadcast %cst_25 : f32 to vector<16x1xf32>
    %67 = arith.addf %63, %66 : vector<16x1xf32>
    %68 = math.rsqrt %67 : vector<16x1xf32>
    %69 = vector.broadcast %68 : vector<16x1xf32> to vector<16x32xf32>
    %70 = arith.mulf %65, %69 : vector<16x32xf32>
    %71 = vector.broadcast %14 : vector<1x32xf32> to vector<16x32xf32>
    %72 = arith.mulf %70, %71 : vector<16x32xf32>
    %73 = vector.broadcast %15 : vector<1x32xf32> to vector<16x32xf32>
    %74 = arith.addf %72, %73 : vector<16x32xf32>
    %75 = arith.truncf %74 : vector<16x32xf32> to vector<16x32xbf16>
    %cst_26 = arith.constant dense<0.000000e+00> : vector<16x64xf32>
    %76 = tpu.matmul %75, %8, %cst_26 {dimension_numbers = #tpu.dot_dimension_numbers<[1], [0], [0], [1], [0, 0, 1, 1], [], []>} : vector<16x32xbf16>, vector<32x64xbf16>, vector<16x64xf32> -> vector<16x64xf32>
    %77 = vector.broadcast %12 : vector<1x64xf32> to vector<16x64xf32>
    %78 = arith.addf %76, %77 : vector<16x64xf32>
    %cst_27 = arith.constant 0.000000e+00 : f32
    %79 = vector.broadcast %cst_27 : f32 to vector<16x64xf32>
    %80 = arith.maximumf %78, %79 : vector<16x64xf32>
    %81 = arith.truncf %80 : vector<16x64xf32> to vector<16x64xbf16>
    %cst_28 = arith.constant dense<0.000000e+00> : vector<16x32xf32>
    %82 = tpu.matmul %81, %9, %cst_28 {dimension_numbers = #tpu.dot_dimension_numbers<[1], [0], [0], [1], [0, 0, 1, 1], [], []>} : vector<16x64xbf16>, vector<64x32xbf16>, vector<16x32xf32> -> vector<16x32xf32>
    %83 = vector.broadcast %13 : vector<1x32xf32> to vector<16x32xf32>
    %84 = arith.addf %82, %83 : vector<16x32xf32>
    %85 = arith.addf %74, %84 : vector<16x32xf32>
    %cst_29 = arith.constant dense<0.000000e+00> : vector<16xf32>
    %86 = vector.multi_reduction <add>, %85, %cst_29 [1] : vector<16x32xf32> to vector<16xf32>
    %87 = vector.shape_cast %86 : vector<16xf32> to vector<16x1xf32>
    %cst_30 = arith.constant 3.200000e+01 : f32
    %88 = vector.broadcast %cst_30 : f32 to vector<16x1xf32>
    %89 = arith.divf %87, %88 : vector<16x1xf32>
    %90 = vector.broadcast %89 : vector<16x1xf32> to vector<16x32xf32>
    %91 = arith.subf %85, %90 : vector<16x32xf32>
    %92 = arith.mulf %91, %91 : vector<16x32xf32>
    %cst_31 = arith.constant dense<0.000000e+00> : vector<16xf32>
    %93 = vector.multi_reduction <add>, %92, %cst_31 [1] : vector<16x32xf32> to vector<16xf32>
    %94 = vector.shape_cast %93 : vector<16xf32> to vector<16x1xf32>
    %cst_32 = arith.constant 3.200000e+01 : f32
    %95 = vector.broadcast %cst_32 : f32 to vector<16x1xf32>
    %96 = arith.divf %94, %95 : vector<16x1xf32>
    %97 = vector.broadcast %89 : vector<16x1xf32> to vector<16x32xf32>
    %98 = arith.subf %85, %97 : vector<16x32xf32>
    %cst_33 = arith.constant 9.99999974E-6 : f32
    %99 = vector.broadcast %cst_33 : f32 to vector<16x1xf32>
    %100 = arith.addf %96, %99 : vector<16x1xf32>
    %101 = math.rsqrt %100 : vector<16x1xf32>
    %102 = vector.broadcast %101 : vector<16x1xf32> to vector<16x32xf32>
    %103 = arith.mulf %98, %102 : vector<16x32xf32>
    %104 = vector.broadcast %16 : vector<1x32xf32> to vector<16x32xf32>
    %105 = arith.mulf %103, %104 : vector<16x32xf32>
    %106 = vector.broadcast %17 : vector<1x32xf32> to vector<16x32xf32>
    %107 = arith.addf %105, %106 : vector<16x32xf32>
    %c160 = arith.constant 160 : index
    %c0_34 = arith.constant 0 : index
    %108 = vector.load %arg1[%c160, %c0_34] : memref<352x512xbf16, #tpu.memory_space<vmem>>, vector<32x96xbf16>
    %c192 = arith.constant 192 : index
    %c0_35 = arith.constant 0 : index
    %109 = vector.load %arg1[%c192, %c0_35] : memref<352x512xbf16, #tpu.memory_space<vmem>>, vector<32x32xbf16>
    %c224 = arith.constant 224 : index
    %c0_36 = arith.constant 0 : index
    %110 = vector.load %arg1[%c224, %c0_36] : memref<352x512xbf16, #tpu.memory_space<vmem>>, vector<32x64xbf16>
    %c256 = arith.constant 256 : index
    %c0_37 = arith.constant 0 : index
    %111 = vector.load %arg1[%c256, %c0_37] : memref<352x512xbf16, #tpu.memory_space<vmem>>, vector<64x32xbf16>
    %c16 = arith.constant 16 : index
    %c0_38 = arith.constant 0 : index
    %112 = vector.load %arg2[%c16, %c0_38] : memref<32x512xf32, #tpu.memory_space<vmem>>, vector<1x96xf32>
    %c17 = arith.constant 17 : index
    %c0_39 = arith.constant 0 : index
    %113 = vector.load %arg2[%c17, %c0_39] : memref<32x512xf32, #tpu.memory_space<vmem>>, vector<1x32xf32>
    %c18 = arith.constant 18 : index
    %c0_40 = arith.constant 0 : index
    %114 = vector.load %arg2[%c18, %c0_40] : memref<32x512xf32, #tpu.memory_space<vmem>>, vector<1x64xf32>
    %c19 = arith.constant 19 : index
    %c0_41 = arith.constant 0 : index
    %115 = vector.load %arg2[%c19, %c0_41] : memref<32x512xf32, #tpu.memory_space<vmem>>, vector<1x32xf32>
    %c20 = arith.constant 20 : index
    %c0_42 = arith.constant 0 : index
    %116 = vector.load %arg2[%c20, %c0_42] : memref<32x512xf32, #tpu.memory_space<vmem>>, vector<1x32xf32>
    %c21 = arith.constant 21 : index
    %c0_43 = arith.constant 0 : index
    %117 = vector.load %arg2[%c21, %c0_43] : memref<32x512xf32, #tpu.memory_space<vmem>>, vector<1x32xf32>
    %c22 = arith.constant 22 : index
    %c0_44 = arith.constant 0 : index
    %118 = vector.load %arg2[%c22, %c0_44] : memref<32x512xf32, #tpu.memory_space<vmem>>, vector<1x32xf32>
    %c23 = arith.constant 23 : index
    %c0_45 = arith.constant 0 : index
    %119 = vector.load %arg2[%c23, %c0_45] : memref<32x512xf32, #tpu.memory_space<vmem>>, vector<1x32xf32>
    %120 = arith.truncf %107 : vector<16x32xf32> to vector<16x32xbf16>
    %cst_46 = arith.constant dense<0.000000e+00> : vector<16x96xf32>
    %121 = tpu.matmul %120, %108, %cst_46 {dimension_numbers = #tpu.dot_dimension_numbers<[1], [0], [0], [1], [0, 0, 1, 1], [], []>} : vector<16x32xbf16>, vector<32x96xbf16>, vector<16x96xf32> -> vector<16x96xf32>
    %122 = vector.broadcast %112 : vector<1x96xf32> to vector<16x96xf32>
    %123 = arith.addf %121, %122 : vector<16x96xf32>
    %124 = vector.extract_strided_slice %123 {offsets = [0, 0], sizes = [16, 32], strides = [1, 1]} : vector<16x96xf32> to vector<16x32xf32>
    %125 = vector.shape_cast %124 : vector<16x32xf32> to vector<2x8x32xf32>
    %126 = vector.extract_strided_slice %123 {offsets = [0, 32], sizes = [16, 32], strides = [1, 1]} : vector<16x96xf32> to vector<16x32xf32>
    %127 = vector.shape_cast %126 : vector<16x32xf32> to vector<2x8x32xf32>
    %128 = vector.extract_strided_slice %123 {offsets = [0, 64], sizes = [16, 32], strides = [1, 1]} : vector<16x96xf32> to vector<16x32xf32>
    %129 = vector.shape_cast %128 : vector<16x32xf32> to vector<2x8x32xf32>
    %130 = vector.shape_cast %125 : vector<2x8x32xf32> to vector<2x8x1x32xf32>
    %131 = vector.shape_cast %127 : vector<2x8x32xf32> to vector<2x1x8x32xf32>
    %132 = vector.broadcast %130 : vector<2x8x1x32xf32> to vector<2x8x8x32xf32>
    %133 = vector.broadcast %131 : vector<2x1x8x32xf32> to vector<2x8x8x32xf32>
    %134 = arith.mulf %132, %133 : vector<2x8x8x32xf32>
    %cst_47 = arith.constant dense<0xFF800000> : vector<2x8x32xf32>
    %135 = vector.multi_reduction <maximumf>, %134, %cst_47 [2] : vector<2x8x8x32xf32> to vector<2x8x32xf32>
    %136 = vector.shape_cast %135 : vector<2x8x32xf32> to vector<2x8x1x32xf32>
    %137 = vector.broadcast %136 : vector<2x8x1x32xf32> to vector<2x8x8x32xf32>
    %138 = arith.subf %134, %137 : vector<2x8x8x32xf32>
    %139 = math.exp %138 : vector<2x8x8x32xf32>
    %cst_48 = arith.constant dense<0.000000e+00> : vector<2x8x32xf32>
    %140 = vector.multi_reduction <add>, %139, %cst_48 [2] : vector<2x8x8x32xf32> to vector<2x8x32xf32>
    %141 = vector.shape_cast %140 : vector<2x8x32xf32> to vector<2x8x1x32xf32>
    %142 = tpu.reciprocal %141 {approx = true} : vector<2x8x1x32xf32> -> vector<2x8x1x32xf32>
    %143 = vector.broadcast %142 : vector<2x8x1x32xf32> to vector<2x8x8x32xf32>
    %144 = arith.mulf %139, %143 : vector<2x8x8x32xf32>
    %145 = vector.shape_cast %129 : vector<2x8x32xf32> to vector<2x1x8x32xf32>
    %146 = vector.broadcast %145 : vector<2x1x8x32xf32> to vector<2x8x8x32xf32>
    %147 = arith.mulf %144, %146 : vector<2x8x8x32xf32>
    %cst_49 = arith.constant dense<0.000000e+00> : vector<2x8x32xf32>
    %148 = vector.multi_reduction <add>, %147, %cst_49 [2] : vector<2x8x8x32xf32> to vector<2x8x32xf32>
    %149 = vector.shape_cast %148 : vector<2x8x32xf32> to vector<16x32xf32>
    %150 = arith.truncf %149 : vector<16x32xf32> to vector<16x32xbf16>
    %cst_50 = arith.constant dense<0.000000e+00> : vector<16x32xf32>
    %151 = tpu.matmul %150, %109, %cst_50 {dimension_numbers = #tpu.dot_dimension_numbers<[1], [0], [0], [1], [0, 0, 1, 1], [], []>} : vector<16x32xbf16>, vector<32x32xbf16>, vector<16x32xf32> -> vector<16x32xf32>
    %152 = vector.broadcast %113 : vector<1x32xf32> to vector<16x32xf32>
    %153 = arith.addf %151, %152 : vector<16x32xf32>
    %154 = arith.addf %107, %153 : vector<16x32xf32>
    %cst_51 = arith.constant dense<0.000000e+00> : vector<16xf32>
    %155 = vector.multi_reduction <add>, %154, %cst_51 [1] : vector<16x32xf32> to vector<16xf32>
    %156 = vector.shape_cast %155 : vector<16xf32> to vector<16x1xf32>
    %cst_52 = arith.constant 3.200000e+01 : f32
    %157 = vector.broadcast %cst_52 : f32 to vector<16x1xf32>
    %158 = arith.divf %156, %157 : vector<16x1xf32>
    %159 = vector.broadcast %158 : vector<16x1xf32> to vector<16x32xf32>
    %160 = arith.subf %154, %159 : vector<16x32xf32>
    %161 = arith.mulf %160, %160 : vector<16x32xf32>
    %cst_53 = arith.constant dense<0.000000e+00> : vector<16xf32>
    %162 = vector.multi_reduction <add>, %161, %cst_53 [1] : vector<16x32xf32> to vector<16xf32>
    %163 = vector.shape_cast %162 : vector<16xf32> to vector<16x1xf32>
    %cst_54 = arith.constant 3.200000e+01 : f32
    %164 = vector.broadcast %cst_54 : f32 to vector<16x1xf32>
    %165 = arith.divf %163, %164 : vector<16x1xf32>
    %166 = vector.broadcast %158 : vector<16x1xf32> to vector<16x32xf32>
    %167 = arith.subf %154, %166 : vector<16x32xf32>
    %cst_55 = arith.constant 9.99999974E-6 : f32
    %168 = vector.broadcast %cst_55 : f32 to vector<16x1xf32>
    %169 = arith.addf %165, %168 : vector<16x1xf32>
    %170 = math.rsqrt %169 : vector<16x1xf32>
    %171 = vector.broadcast %170 : vector<16x1xf32> to vector<16x32xf32>
    %172 = arith.mulf %167, %171 : vector<16x32xf32>
    %173 = vector.broadcast %116 : vector<1x32xf32> to vector<16x32xf32>
    %174 = arith.mulf %172, %173 : vector<16x32xf32>
    %175 = vector.broadcast %117 : vector<1x32xf32> to vector<16x32xf32>
    %176 = arith.addf %174, %175 : vector<16x32xf32>
    %177 = arith.truncf %176 : vector<16x32xf32> to vector<16x32xbf16>
    %cst_56 = arith.constant dense<0.000000e+00> : vector<16x64xf32>
    %178 = tpu.matmul %177, %110, %cst_56 {dimension_numbers = #tpu.dot_dimension_numbers<[1], [0], [0], [1], [0, 0, 1, 1], [], []>} : vector<16x32xbf16>, vector<32x64xbf16>, vector<16x64xf32> -> vector<16x64xf32>
    %179 = vector.broadcast %114 : vector<1x64xf32> to vector<16x64xf32>
    %180 = arith.addf %178, %179 : vector<16x64xf32>
    %cst_57 = arith.constant 0.000000e+00 : f32
    %181 = vector.broadcast %cst_57 : f32 to vector<16x64xf32>
    %182 = arith.maximumf %180, %181 : vector<16x64xf32>
    %183 = arith.truncf %182 : vector<16x64xf32> to vector<16x64xbf16>
    %cst_58 = arith.constant dense<0.000000e+00> : vector<16x32xf32>
    %184 = tpu.matmul %183, %111, %cst_58 {dimension_numbers = #tpu.dot_dimension_numbers<[1], [0], [0], [1], [0, 0, 1, 1], [], []>} : vector<16x64xbf16>, vector<64x32xbf16>, vector<16x32xf32> -> vector<16x32xf32>
    %185 = vector.broadcast %115 : vector<1x32xf32> to vector<16x32xf32>
    %186 = arith.addf %184, %185 : vector<16x32xf32>
    %187 = arith.addf %176, %186 : vector<16x32xf32>
    %cst_59 = arith.constant dense<0.000000e+00> : vector<16xf32>
    %188 = vector.multi_reduction <add>, %187, %cst_59 [1] : vector<16x32xf32> to vector<16xf32>
    %189 = vector.shape_cast %188 : vector<16xf32> to vector<16x1xf32>
    %cst_60 = arith.constant 3.200000e+01 : f32
    %190 = vector.broadcast %cst_60 : f32 to vector<16x1xf32>
    %191 = arith.divf %189, %190 : vector<16x1xf32>
    %192 = vector.broadcast %191 : vector<16x1xf32> to vector<16x32xf32>
    %193 = arith.subf %187, %192 : vector<16x32xf32>
    %194 = arith.mulf %193, %193 : vector<16x32xf32>
    %cst_61 = arith.constant dense<0.000000e+00> : vector<16xf32>
    %195 = vector.multi_reduction <add>, %194, %cst_61 [1] : vector<16x32xf32> to vector<16xf32>
    %196 = vector.shape_cast %195 : vector<16xf32> to vector<16x1xf32>
    %cst_62 = arith.constant 3.200000e+01 : f32
    %197 = vector.broadcast %cst_62 : f32 to vector<16x1xf32>
    %198 = arith.divf %196, %197 : vector<16x1xf32>
    %199 = vector.broadcast %191 : vector<16x1xf32> to vector<16x32xf32>
    %200 = arith.subf %187, %199 : vector<16x32xf32>
    %cst_63 = arith.constant 9.99999974E-6 : f32
    %201 = vector.broadcast %cst_63 : f32 to vector<16x1xf32>
    %202 = arith.addf %198, %201 : vector<16x1xf32>
    %203 = math.rsqrt %202 : vector<16x1xf32>
    %204 = vector.broadcast %203 : vector<16x1xf32> to vector<16x32xf32>
    %205 = arith.mulf %200, %204 : vector<16x32xf32>
    %206 = vector.broadcast %118 : vector<1x32xf32> to vector<16x32xf32>
    %207 = arith.mulf %205, %206 : vector<16x32xf32>
    %208 = vector.broadcast %119 : vector<1x32xf32> to vector<16x32xf32>
    %209 = arith.addf %207, %208 : vector<16x32xf32>
    %c320 = arith.constant 320 : index
    %c0_64 = arith.constant 0 : index
    %210 = vector.load %arg1[%c320, %c0_64] : memref<352x512xbf16, #tpu.memory_space<vmem>>, vector<32x512xbf16>
    %c24 = arith.constant 24 : index
    %c0_65 = arith.constant 0 : index
    %211 = vector.load %arg2[%c24, %c0_65] : memref<32x512xf32, #tpu.memory_space<vmem>>, vector<1x512xf32>
    %c25 = arith.constant 25 : index
    %c0_66 = arith.constant 0 : index
    %212 = vector.load %arg2[%c25, %c0_66] : memref<32x512xf32, #tpu.memory_space<vmem>>, vector<1x512xf32>
    %c26 = arith.constant 26 : index
    %c0_67 = arith.constant 0 : index
    %213 = vector.load %arg2[%c26, %c0_67] : memref<32x512xf32, #tpu.memory_space<vmem>>, vector<1x1xf32>
    %214 = arith.truncf %209 : vector<16x32xf32> to vector<16x32xbf16>
    %cst_68 = arith.constant dense<0.000000e+00> : vector<16x512xf32>
    %215 = tpu.matmul %214, %210, %cst_68 {dimension_numbers = #tpu.dot_dimension_numbers<[1], [0], [0], [1], [0, 0, 1, 1], [], []>} : vector<16x32xbf16>, vector<32x512xbf16>, vector<16x512xf32> -> vector<16x512xf32>
    %216 = vector.broadcast %211 : vector<1x512xf32> to vector<16x512xf32>
    %217 = arith.addf %215, %216 : vector<16x512xf32>
    %cst_69 = arith.constant 0.000000e+00 : f32
    %218 = vector.broadcast %cst_69 : f32 to vector<16x512xf32>
    %219 = arith.maximumf %217, %218 : vector<16x512xf32>
    %220 = vector.shape_cast %219 : vector<16x512xf32> to vector<2x8x512xf32>
    %221 = vector.shape_cast %212 : vector<1x512xf32> to vector<1x1x512xf32>
    %222 = vector.broadcast %221 : vector<1x1x512xf32> to vector<2x8x512xf32>
    %223 = arith.mulf %220, %222 : vector<2x8x512xf32>
    %cst_70 = arith.constant dense<0.000000e+00> : vector<2x8xf32>
    %224 = vector.multi_reduction <add>, %223, %cst_70 [2] : vector<2x8x512xf32> to vector<2x8xf32>
    %225 = vector.broadcast %213 : vector<1x1xf32> to vector<2x8xf32>
    %226 = arith.addf %224, %225 : vector<2x8xf32>
    %cst_71 = arith.constant 0.000000e+00 : f32
    %227 = vector.broadcast %cst_71 : f32 to vector<2x8xf32>
    %228 = arith.subf %227, %226 : vector<2x8xf32>
    %229 = math.exp %228 : vector<2x8xf32>
    %cst_72 = arith.constant 1.000000e+00 : f32
    %230 = vector.broadcast %cst_72 : f32 to vector<2x8xf32>
    %231 = arith.addf %230, %229 : vector<2x8xf32>
    %232 = tpu.reciprocal %231 {approx = true} : vector<2x8xf32> -> vector<2x8xf32>
    %cst_73 = arith.constant 0.000000e+00 : f32
    %cst_74 = arith.constant 1.000000e+00 : f32
    %233 = vector.broadcast %cst_73 : f32 to vector<2x8xf32>
    %234 = arith.maximumf %233, %232 : vector<2x8xf32>
    %235 = vector.broadcast %cst_74 : f32 to vector<2x8xf32>
    %236 = arith.minimumf %235, %234 : vector<2x8xf32>
    %c0_75 = arith.constant 0 : index
    %c0_76 = arith.constant 0 : index
    %237 = vector.load %arg3[%c0_75, %c0_76] : memref<2x8xf32, #tpu.memory_space<vmem>>, vector<2x8xf32>
    tpu.vector_store %arg3[%c0_75, %c0_76], %236 {strides = array<i32>} : memref<2x8xf32, #tpu.memory_space<vmem>>, vector<2x8xf32>,
    return
  }
}

</mosaic_0001>

<bundles_post_ra>
// kernel: _lambda_.1
= control target key start
LH: loop header
LB: loop body
LE: loop exit
PB: predicated region body
PF: predicated region fallthrough
CT: control target
= control target key end

     0   :  { %8 = vsyncpa [#allocation3], 0  ;;  %s3045_s0 = inlined_call_operand.vmem [shape: f32[2,8,32], index: 0, kind: input, shape index: {}]   ;;  %s3046_s1 = inlined_call_operand.hbm [shape: bf16[352,512], index: 1, kind: input, shape index: {}]   ;;  %s3047_s2 = inlined_call_operand.hbm [shape: f32[32,512], index: 2, kind: input, shape index: {}]   ;;  %s3048_s3 = inlined_call_operand.hbm [shape: f32[2,8], index: 3, kind: output, shape index: {}]  }
   0x1   :  { %9 = vsyncpa [#allocation6], 0 }
   0x2   :  { %10 = vsyncpa [#allocation4], 0  ;;  %s17_s14 = sshll.u32 %s3046_s1, 4  ;;  %s2336_s15 = smov [#allocation2]   ;;  %s18_s14 = int_to_ptr.hbm [resolvable:$true] %s17_s14 }
   0x3   :  { %s19_s16 = sshll.u32 %s2336_s15, 4  ;;  %s30_s19 = sshll.u32 %s3047_s2, 4  ;;  %s20_s16 = int_to_ptr.vmem [resolvable:$true] %s19_s16  ;;  %s31_s19 = int_to_ptr.hbm [resolvable:$true] %s30_s19 }
   0x4   :  { %s2337_s20 = smov 256   ;;  %s2338_s21 = smov 16  }
   0x5   :  { %25 = dma.hbm_to_vmem [thread:$0]  %s18_s14, 11264, %s20_s16, [#allocation3], %s2337_s20, %s2337_s20, %s2338_s21  }
   0x6   :  { %s2339_s22 = smov [#allocation5]   ;;  %s2340_s24 = smov 512  }
   0x7   :  { %s32_s23 = sshll.u32 %s2339_s22, 4  ;;  %s2341_s25 = smov 32   ;;  %s33_s23 = int_to_ptr.vmem [resolvable:$true] %s32_s23 }
   0x8   :  { %38 = dma.hbm_to_vmem [thread:$0]  %s31_s19, 2048, %s33_s23, [#allocation6], %s2340_s24, %s2340_s24, %s2341_s25  }
   0x9   :  { %2330 = dma.done.wait [#allocation3], 11264  }
   0xa   :  { %2331 = vsyncadd [#allocation3], 4294956032 }
   0xb   :  { %2332 = dma.done.wait [#allocation6], 2048  }
   0xc   :  { %2333 = vsyncadd [#allocation6], 4294965248  ;;  %v1945_v0 = vld [vmem:[#allocation2 + $0x20] sm:$0xf]  ;;  %v2064_v1 = vld [vmem:[#allocation2 + $0x2c] sm:$0xf0] }
   0xd   :  { %v1941_v2 = vld [vmem:[#allocation2] sm:$0xf]  ;;  %v1946_v3 = vor.u32 %v2064_v1, %v1945_v0  ;;  %v2063_v4 = vld [vmem:[#allocation2 + $0xc] sm:$0xf0]  ;;  %v50_v7 = vld [vmem:[%s3045_s0 + $0x8] sm:$0xff]  ;;  %vm94_vm0 = vcmask 261120  }
   0xe   :  { %v48_v5 = vld [vmem:[#allocation5] sm:$0xff]  ;;  %v1942_v9 = vor.u32 %v2063_v4, %v1941_v2  ;;  %s2342_s28 = smov 64   ;;  %vm668_vm1 = vcmask 1041409   ;;  %vm670_vm2 = vcmask 1042434   ;;  %vm672_vm3 = vcmask 1043459   ;;  %s2346_s29 = smov [#allocation7]  }
   0xf   :  { %v49_v6 = vld [vmem:[%s3045_s0] sm:$0xff]  ;;  %104 = vmatpush.bf16.msra.mxu0 %v1946_v3  ;;  %v2381_v10 = vadd.f32 %v50_v7, %v48_v5  ;;  %s2343_s0 = smov 96   ;;  %vm674_vm4 = vcmask 1044484   ;;  %vm676_vm5 = vcmask 1045509   ;;  %vm678_vm6 = vcmask 1046534   ;;  %s1926_s30 = sshll.u32 %s2346_s29, 4  ;;  %s1927_s30 = int_to_ptr.vmem [resolvable:$true] %s1926_s30 }
  0x10   :  { %v2379_v8 = vadd.f32 %v49_v6, %v48_v5  ;;  %v73_v12 = vld [vmem:[#allocation5 + $0x20] ss:$0 sm:$0xff]  ;;  %vm680_vm7 = vcmask 1047559   ;;  %vm833_vm15 = vcmask 523264   ;;  %s1928_s6 = sshll.u32 %s3048_s3, 4  ;;  %s1929_s6 = int_to_ptr.hbm [resolvable:$true] %s1928_s6 }
  0x12   :  { %v81_v11 = vpack.c.bf16 %v2381_v10, %v2379_v8 }
  0x13   :  { %105 = vmatpush.bf16.msra.mxu0 %v1942_v9 }
  0x16   :  { %1947 = vmatmul.msk.bf16.vlgmr.msra.gmra.mxu0 %vm94_vm0, %v81_v11 }
  0x93   :  { %v107_v13 = vpop.f32.mrf.mxu0 }
  0x94   :  { %v108_v14 = vadd.f32 %v107_v13, %v73_v12 }
  0x96   :  { %486 = vrot.lane.b32.xlu1 %v108_v14, %s2342_s28  ;;  %160 = vrot.lane.b32.xlu0 %v108_v14, %s2343_s0  ;;  %v114_v17 = vrot.slane %v108_v14, 1  ;;  %v115_v18 = vrot.slane %v108_v14, 2  ;;  %v116_v19 = vrot.slane %v108_v14, 3  ;;  %v117_v20 = vrot.slane %v108_v14, 4 }
  0x97   :  { %v118_v21 = vrot.slane %v108_v14, 5  ;;  %v119_v22 = vrot.slane %v108_v14, 6  ;;  %v120_v23 = vrot.slane %v108_v14, 7  ;;  %v128_v26 = vperm.slane %v108_v14, 0 }
  0x98   :  { %v129_v27 = vperm.slane %v114_v17, 0  ;;  %v130_v28 = vperm.slane %v115_v18, 0  ;;  %v131_v29 = vperm.slane %v116_v19, 0  ;;  %v132_v30 = vperm.slane %v117_v20, 0 }
  0x99   :  { %v133_v31 = vperm.slane %v118_v21, 0  ;;  %v134_v32 = vperm.slane %v119_v22, 0  ;;  %v135_v33 = vperm.slane %v120_v23, 0 }
  0x9b   :  { %v109_v15 = vpop.f32.mrf.mxu0 }
  0x9c   :  { %v2388_v16 = vadd.f32 %v109_v15, %v73_v12 }
  0x9e   :  { %488 = vrot.lane.b32.xlu1 %v2388_v16, %s2342_s28  ;;  %162 = vrot.lane.b32.xlu0 %v2388_v16, %s2343_s0  ;;  %v121_v24 = vrot.slane %v2388_v16, 1  ;;  %v122_v25 = vrot.slane %v2388_v16, 2  ;;  %v123_v34 = vrot.slane %v2388_v16, 3  ;;  %v124_v35 = vrot.slane %v2388_v16, 4 }
  0x9f   :  { %v125_v36 = vrot.slane %v2388_v16, 5  ;;  %v126_v37 = vrot.slane %v2388_v16, 6  ;;  %v127_v39 = vrot.slane %v2388_v16, 7  ;;  %v136_v40 = vperm.slane %v2388_v16, 0 }
  0xa0   :  { %v2402_v41 = vperm.slane %v121_v24, 0  ;;  %v2404_v42 = vperm.slane %v122_v25, 0 }
 0x108   :  { %v161_v38 = vpop.permute.xlu0 %160 }
 0x109   :  { %v2406_v43 = vmul.f32 %v161_v38, %v128_v26  ;;  %v2408_v44 = vmul.f32 %v161_v38, %v129_v27  ;;  %v2410_v45 = vmul.f32 %v161_v38, %v130_v28  ;;  %v2412_v46 = vmul.f32 %v161_v38, %v131_v29 }
 0x10a   :  { %v2414_v47 = vmul.f32 %v161_v38, %v132_v30  ;;  %v2416_v48 = vmul.f32 %v161_v38, %v133_v31  ;;  %v2418_v49 = vmul.f32 %v161_v38, %v134_v32  ;;  %v2420_v50 = vmul.f32 %v161_v38, %v135_v33 }
 0x10b   :  { %v182_v51 = vsel %vm94_vm0, %v2406_v43, -inf  ;;  %v189_v52 = vsel %vm94_vm0, %v2408_v44, -inf  ;;  %v196_v53 = vsel %vm94_vm0, %v2410_v45, -inf  ;;  %v203_v54 = vsel %vm94_vm0, %v2412_v46, -inf }
 0x10c   :  { %v183_v55 = vrot.slane %v182_v51, 4  ;;  %v190_v56 = vrot.slane %v189_v52, 4  ;;  %v197_v57 = vrot.slane %v196_v53, 4  ;;  %v204_v58 = vrot.slane %v203_v54, 4 }
 0x10d   :  { %v210_v59 = vsel %vm94_vm0, %v2414_v47, -inf  ;;  %v217_v60 = vsel %vm94_vm0, %v2416_v48, -inf  ;;  %v224_v61 = vsel %vm94_vm0, %v2418_v49, -inf  ;;  %v231_v62 = vsel %vm94_vm0, %v2420_v50, -inf }
 0x10e   :  { %v184_v63 = vmax.f32 %v182_v51, %v183_v55  ;;  %v191_v0 = vmax.f32 %v189_v52, %v190_v56  ;;  %v198_v1 = vmax.f32 %v196_v53, %v197_v57  ;;  %v205_v2 = vmax.f32 %v203_v54, %v204_v58 }
 0x10f   :  { %v211_v3 = vrot.slane %v210_v59, 4  ;;  %v218_v4 = vrot.slane %v217_v60, 4  ;;  %v225_v5 = vrot.slane %v224_v61, 4  ;;  %v232_v6 = vrot.slane %v231_v62, 4 }
 0x110   :  { %v185_v7 = vrot.slane %v184_v63, 2  ;;  %v192_v9 = vrot.slane %v191_v0, 2  ;;  %v199_v11 = vrot.slane %v198_v1, 2  ;;  %v206_v12 = vrot.slane %v205_v2, 2  ;;  %v2438_v58 = vpop.permute.xlu0 %162 }
 0x111   :  { %v212_v13 = vmax.f32 %v210_v59, %v211_v3  ;;  %v219_v14 = vmax.f32 %v217_v60, %v218_v4  ;;  %v226_v15 = vmax.f32 %v224_v61, %v225_v5  ;;  %v233_v17 = vmax.f32 %v231_v62, %v232_v6 }
 0x112   :  { %v186_v18 = vmax.f32 %v184_v63, %v185_v7  ;;  %v193_v19 = vmax.f32 %v191_v0, %v192_v9  ;;  %v200_v20 = vmax.f32 %v198_v1, %v199_v11  ;;  %v207_v21 = vmax.f32 %v205_v2, %v206_v12 }
 0x113   :  { %v213_v22 = vrot.slane %v212_v13, 2  ;;  %v220_v23 = vrot.slane %v219_v14, 2  ;;  %v227_v24 = vrot.slane %v226_v15, 2  ;;  %v234_v25 = vrot.slane %v233_v17, 2 }
 0x114   :  { %v187_v26 = vrot.slane %v186_v18, 1  ;;  %v194_v27 = vrot.slane %v193_v19, 1  ;;  %v201_v28 = vrot.slane %v200_v20, 1  ;;  %v208_v29 = vrot.slane %v207_v21, 1 }
 0x115   :  { %v214_v30 = vmax.f32 %v212_v13, %v213_v22  ;;  %v221_v31 = vmax.f32 %v219_v14, %v220_v23  ;;  %v228_v32 = vmax.f32 %v226_v15, %v227_v24  ;;  %v235_v33 = vmax.f32 %v233_v17, %v234_v25 }
 0x116   :  { %v188_v38 = vmax.f32 %v186_v18, %v187_v26  ;;  %v195_v51 = vmax.f32 %v193_v19, %v194_v27  ;;  %v202_v52 = vmax.f32 %v200_v20, %v201_v28  ;;  %v209_v53 = vmax.f32 %v207_v21, %v208_v29 }
 0x117   :  { %v215_v54 = vrot.slane %v214_v30, 1  ;;  %v222_v55 = vrot.slane %v221_v31, 1  ;;  %v229_v56 = vrot.slane %v228_v32, 1  ;;  %v236_v57 = vrot.slane %v235_v33, 1 }
 0x118   :  { %v294_v59 = vsub.f32 %v2406_v43, %v188_v38  ;;  %v295_v60 = vsub.f32 %v2408_v44, %v195_v51  ;;  %v296_v61 = vsub.f32 %v2410_v45, %v202_v52  ;;  %v297_v62 = vsub.f32 %v2412_v46, %v209_v53 }
 0x119   :  { %v216_v63 = vmax.f32 %v214_v30, %v215_v54  ;;  %v223_v0 = vmax.f32 %v221_v31, %v222_v55  ;;  %v230_v1 = vmax.f32 %v228_v32, %v229_v56  ;;  %v237_v2 = vmax.f32 %v235_v33, %v236_v57 }
 0x11a   :  { %v310_v3 = vmul.f32 1.442695, %v294_v59  ;;  %v312_v4 = vmul.f32 1.442695, %v295_v60  ;;  %v314_v5 = vmul.f32 1.442695, %v296_v61  ;;  %v2447_v6 = vmul.f32 %v2438_v58, %v136_v40 }
 0x11b   :  { %v298_v43 = vsub.f32 %v2414_v47, %v216_v63  ;;  %v299_v44 = vsub.f32 %v2416_v48, %v223_v0  ;;  %v300_v45 = vsub.f32 %v2418_v49, %v230_v1  ;;  %v301_v46 = vsub.f32 %v2420_v50, %v237_v2 }
 0x11c   :  { %2104 = vpow2.f32 %v310_v3  ;;  %v316_v7 = vmul.f32 1.442695, %v297_v62  ;;  %v2455_v9 = vmul.f32 %v2438_v58, %v2402_v41  ;;  %v2459_v11 = vmul.f32 %v2438_v58, %v2404_v42 }
 0x11d   :  { %2106 = vpow2.f32 %v312_v4  ;;  %v318_v40 = vmul.f32 1.442695, %v298_v43  ;;  %v320_v12 = vmul.f32 1.442695, %v299_v44  ;;  %v139_v47 = vperm.slane %v123_v34, 0 }
 0x11e   :  { %2108 = vpow2.f32 %v314_v5  ;;  %v322_v48 = vmul.f32 1.442695, %v300_v45  ;;  %v140_v49 = vperm.slane %v124_v35, 0  ;;  %v141_v50 = vperm.slane %v125_v36, 0 }
 0x11f   :  { %2110 = vpow2.f32 %v316_v7  ;;  %v324_v41 = vmul.f32 1.442695, %v301_v46  ;;  %v2469_v42 = vperm.slane %v126_v37, 0  ;;  %v2472_v13 = vmul.f32 %v2438_v58, %v139_v47 }
 0x120   :  { %2112 = vpow2.f32 %v318_v40  ;;  %v238_v34 = vsel %vm94_vm0, %v2447_v6, -inf  ;;  %v245_v14 = vsel %vm94_vm0, %v2455_v9, -inf  ;;  %v252_v35 = vsel %vm94_vm0, %v2459_v11, -inf }
 0x121   :  { %2114 = vpow2.f32 %v320_v12  ;;  %v239_v36 = vrot.slane %v238_v34, 4  ;;  %v246_v15 = vrot.slane %v245_v14, 4  ;;  %v253_v17 = vrot.slane %v252_v35, 4 }
 0x122   :  { %v2480_v18 = vpop.eup %2104  ;;  %2116 = vpow2.f32 %v322_v48  ;;  %v143_v37 = vperm.slane %v127_v39, 0  ;;  %v2485_v19 = vmul.f32 %v2438_v58, %v140_v49  ;;  %v2488_v20 = vmul.f32 %v2438_v58, %v141_v50 }
 0x123   :  { %v2490_v21 = vpop.eup %2106  ;;  %2118 = vpow2.f32 %v324_v41  ;;  %v342_v22 = vsel %vm94_vm0, %v2480_v18, 0.0  ;;  %v240_v23 = vmax.f32 %v238_v34, %v239_v36  ;;  %v247_v24 = vmax.f32 %v245_v14, %v246_v15 }
 0x124   :  { %v2494_v25 = vpop.eup %2108  ;;  %v343_v26 = vrot.slane %v342_v22, 4  ;;  %v349_v16 = vsel %vm94_vm0, %v2490_v21, 0.0  ;;  %v254_v39 = vmax.f32 %v252_v35, %v253_v17  ;;  %v259_v27 = vsel %vm94_vm0, %v2472_v13, -inf }
 0x125   :  { %v2500_v28 = vpop.eup %2110  ;;  %v350_v29 = vrot.slane %v349_v16, 4  ;;  %v356_v30 = vsel %vm94_vm0, %v2494_v25, 0.0  ;;  %v241_v31 = vrot.slane %v240_v23, 2  ;;  %v248_v32 = vrot.slane %v247_v24, 2 }
 0x126   :  { %v2504_v33 = vpop.eup %2112  ;;  %v344_v38 = vadd.f32 %v343_v26, %v342_v22  ;;  %v357_v51 = vrot.slane %v356_v30, 4  ;;  %v363_v52 = vsel %vm94_vm0, %v2500_v28, 0.0  ;;  %v255_v53 = vrot.slane %v254_v39, 2 }
 0x127   :  { %v2508_v54 = vpop.eup %2114  ;;  %v351_v55 = vadd.f32 %v350_v29, %v349_v16  ;;  %v364_v56 = vrot.slane %v363_v52, 4  ;;  %v370_v57 = vsel %vm94_vm0, %v2504_v33, 0.0  ;;  %v242_v59 = vmax.f32 %v240_v23, %v241_v31 }
 0x128   :  { %v2512_v60 = vpop.eup %2116  ;;  %v345_v61 = vrot.slane %v344_v38, 2  ;;  %v358_v62 = vadd.f32 %v357_v51, %v356_v30  ;;  %v371_v63 = vrot.slane %v370_v57, 4  ;;  %v377_v0 = vsel %vm94_vm0, %v2508_v54, 0.0 }
 0x129   :  { %v2516_v1 = vpop.eup %2118  ;;  %v352_v2 = vrot.slane %v351_v55, 2  ;;  %v365_v3 = vadd.f32 %v364_v56, %v363_v52  ;;  %v378_v4 = vrot.slane %v377_v0, 4  ;;  %v384_v5 = vsel %vm94_vm0, %v2512_v60, 0.0 }
 0x12a   :  { %v346_v43 = vadd.f32 %v345_v61, %v344_v38  ;;  %v359_v44 = vrot.slane %v358_v62, 2  ;;  %v372_v45 = vadd.f32 %v371_v63, %v370_v57  ;;  %v385_v46 = vrot.slane %v384_v5, 4 }
 0x12b   :  { %v353_v7 = vadd.f32 %v352_v2, %v351_v55  ;;  %v366_v40 = vrot.slane %v365_v3, 2  ;;  %v379_v12 = vadd.f32 %v378_v4, %v377_v0  ;;  %v391_v47 = vsel %vm94_vm0, %v2516_v1, 0.0 }
 0x12c   :  { %v347_v48 = vrot.slane %v346_v43, 1  ;;  %v360_v49 = vadd.f32 %v359_v44, %v358_v62  ;;  %v373_v50 = vrot.slane %v372_v45, 2  ;;  %v2522_v41 = vadd.f32 %v385_v46, %v384_v5 }
 0x12d   :  { %v354_v34 = vrot.slane %v353_v7, 1  ;;  %v367_v14 = vadd.f32 %v366_v40, %v365_v3  ;;  %v380_v35 = vrot.slane %v379_v12, 2  ;;  %v392_v36 = vrot.slane %v391_v47, 4 }
 0x12e   :  { %v361_v15 = vrot.slane %v360_v49, 1  ;;  %v2526_v17 = vmul.f32 %v2438_v58, %v2469_v42  ;;  %v2529_v22 = vmul.f32 %v2438_v58, %v143_v37  ;;  %v260_v23 = vrot.slane %v259_v27, 4 }
 0x12f   :  { %v348_v26 = vadd.f32 %v347_v48, %v346_v43  ;;  %v2531_v16 = vadd.f32 %v373_v50, %v372_v45  ;;  %v266_v29 = vsel %vm94_vm0, %v2485_v19, -inf  ;;  %v273_v30 = vsel %vm94_vm0, %v2488_v20, -inf }
 0x130   :  { %v355_v31 = vadd.f32 %v354_v34, %v353_v7  ;;  %v368_v38 = vrot.slane %v367_v14, 1  ;;  %v387_v51 = vrot.slane %v2522_v41, 2  ;;  %v243_v52 = vrot.slane %v242_v59, 1 }
 0x131   :  { %v2538_v42 = vadd.f32 %v380_v35, %v379_v12  ;;  %v2540_v55 = vadd.f32 %v392_v36, %v391_v47  ;;  %v249_v58 = vmax.f32 %v247_v24, %v248_v32  ;;  %v256_v37 = vmax.f32 %v254_v39, %v255_v53 }
 0x132   :  { %v362_v56 = vadd.f32 %v361_v15, %v360_v49  ;;  %v244_v57 = vmax.f32 %v242_v59, %v243_v52  ;;  %v261_v61 = vmax.f32 %v259_v27, %v260_v23  ;;  %v267_v62 = vrot.slane %v266_v29, 4  ;;  %v1954_v15 = vld [vmem:[#allocation2 + $0x60] sm:$0xf] }
 0x133   :  { %2120 = vrcp.f32 %v348_v26  ;;  %v250_v63 = vrot.slane %v249_v58, 1  ;;  %v257_v0 = vrot.slane %v256_v37, 1  ;;  %v274_v2 = vrot.slane %v273_v30, 4 }
 0x134   :  { %v262_v3 = vrot.slane %v261_v61, 2  ;;  %v268_v4 = vmax.f32 %v266_v29, %v267_v62  ;;  %v280_v5 = vsel %vm94_vm0, %v2526_v17, -inf  ;;  %v287_v43 = vsel %vm94_vm0, %v2529_v22, -inf }
 0x135   :  { %v251_v44 = vmax.f32 %v249_v58, %v250_v63  ;;  %v258_v45 = vmax.f32 %v256_v37, %v257_v0  ;;  %v275_v24 = vmax.f32 %v273_v30, %v274_v2  ;;  %v281_v39 = vrot.slane %v280_v5, 4 }
 0x136   :  { %v263_v32 = vmax.f32 %v261_v61, %v262_v3  ;;  %v269_v53 = vrot.slane %v268_v4, 2  ;;  %v288_v27 = vrot.slane %v287_v43, 4  ;;  %v302_v59 = vsub.f32 %v2447_v6, %v244_v57  ;;  %v2065_v57 = vld [vmem:[#allocation2 + $0x4c] sm:$0xf0] }
 0x137   :  { %v369_v46 = vadd.f32 %v368_v38, %v367_v14  ;;  %v276_v7 = vrot.slane %v275_v24, 2  ;;  %v282_v40 = vmax.f32 %v280_v5, %v281_v39  ;;  %v303_v12 = vsub.f32 %v2455_v9, %v251_v44  ;;  %v2066_v14 = vld [vmem:[#allocation2 + $0x6c] sm:$0xf0] }
 0x138   :  { %2122 = vrcp.f32 %v355_v31  ;;  %v264_v47 = vrot.slane %v263_v32, 1  ;;  %v270_v48 = vmax.f32 %v268_v4, %v269_v53  ;;  %v289_v49 = vmax.f32 %v287_v43, %v288_v27 }
 0x139   :  { %v2121_v50 = vpop.eup %2120  ;;  %2124 = vrcp.f32 %v362_v56  ;;  %v277_v34 = vmax.f32 %v275_v24, %v276_v7  ;;  %v283_v35 = vrot.slane %v282_v40, 2  ;;  %v304_v36 = vsub.f32 %v2459_v11, %v258_v45  ;;  %v1950_v56 = vld [vmem:[#allocation2 + $0x40] sm:$0xf] }
 0x13a   :  { %v265_v23 = vmax.f32 %v263_v32, %v264_v47  ;;  %v271_v26 = vrot.slane %v270_v48, 1  ;;  %v290_v29 = vrot.slane %v289_v49, 2  ;;  %v326_v6 = vmul.f32 1.442695, %v302_v59 }
 0x13b   :  { %v278_v30 = vrot.slane %v277_v34, 1  ;;  %v284_v38 = vmax.f32 %v282_v40, %v283_v35  ;;  %v328_v52 = vmul.f32 1.442695, %v303_v12  ;;  %v330_v9 = vmul.f32 1.442695, %v304_v36 }
 0x13c   :  { %v272_v31 = vmax.f32 %v270_v48, %v271_v26  ;;  %v291_v58 = vmax.f32 %v289_v49, %v290_v29  ;;  %v305_v37 = vsub.f32 %v2472_v13, %v265_v23  ;;  %2126 = vpow2.f32 %v326_v6 }
 0x13d   :  { %v279_v61 = vmax.f32 %v277_v34, %v278_v30  ;;  %v285_v62 = vrot.slane %v284_v38, 1  ;;  %2128 = vpow2.f32 %v328_v52  ;;  %v1955_v11 = vor.u32 %v2066_v14, %v1954_v15 }
 0x13e   :  { %v2123_v63 = vpop.eup %2122  ;;  %v292_v0 = vrot.slane %v291_v58, 1  ;;  %v306_v2 = vsub.f32 %v2485_v19, %v272_v31  ;;  %2130 = vpow2.f32 %v330_v9  ;;  %v332_v3 = vmul.f32 1.442695, %v305_v37 }
 0x13f   :  { %v2125_v4 = vpop.eup %2124  ;;  %2132 = vrcp.f32 %v369_v46  ;;  %v286_v5 = vmax.f32 %v284_v38, %v285_v62  ;;  %v307_v43 = vsub.f32 %v2488_v20, %v279_v61  ;;  %711 = vmatpush.bf16.msra.mxu1 %v1955_v11  ;;  %v1951_v13 = vor.u32 %v2065_v57, %v1950_v56 }
 0x140   :  { %v375_v44 = vrot.slane %v2531_v16, 1  ;;  %v293_v45 = vmax.f32 %v291_v58, %v292_v0  ;;  %2134 = vpow2.f32 %v332_v3  ;;  %v334_v24 = vmul.f32 1.442695, %v306_v2 }
 0x141   :  { %v308_v39 = vsub.f32 %v2526_v17, %v286_v5  ;;  %v336_v32 = vmul.f32 1.442695, %v307_v43  ;;  %v382_v53 = vrot.slane %v2538_v42, 1  ;;  %v388_v19 = vadd.f32 %v387_v51, %v2522_v41 }
 0x142   :  { %v2558_v27 = vpop.eup %2126  ;;  %v2561_v20 = vmul.f32 %v2121_v50, %v2480_v18  ;;  %v309_v59 = vsub.f32 %v2529_v22, %v293_v45  ;;  %2136 = vpow2.f32 %v334_v24  ;;  %v394_v46 = vrot.slane %v2540_v55, 2 }
 0x143   :  { %v2565_v7 = vpop.eup %2128  ;;  %2138 = vpow2.f32 %v336_v32  ;;  %v338_v17 = vmul.f32 1.442695, %v308_v39  ;;  %v398_v40 = vsel %vm94_vm0, %v2558_v27, 0.0  ;;  %712 = vmatpush.bf16.msra.mxu1 %v1951_v13  ;;  %v389_v12 = vrot.slane %v388_v19, 1 }
 0x144   :  { %v2569_v41 = vpop.eup %2130  ;;  %v340_v51 = vmul.f32 1.442695, %v309_v59  ;;  %v399_v47 = vrot.slane %v398_v40, 4  ;;  %v405_v18 = vsel %vm94_vm0, %v2565_v7, 0.0  ;;  %v376_v22 = vadd.f32 %v375_v44, %v2531_v16 }
 0x145   :  { %v2133_v48 = vpop.eup %2132  ;;  %2140 = vpow2.f32 %v338_v17  ;;  %v406_v49 = vrot.slane %v405_v18, 4  ;;  %v412_v50 = vsel %vm94_vm0, %v2569_v41, 0.0  ;;  %v383_v34 = vadd.f32 %v382_v53, %v2538_v42 }
 0x146   :  { %v2577_v35 = vpop.eup %2134  ;;  %v2580_v36 = vmul.f32 %v2123_v63, %v2490_v21  ;;  %2142 = vpow2.f32 %v340_v51  ;;  %v400_v15 = vadd.f32 %v399_v47, %v398_v40  ;;  %v413_v23 = vrot.slane %v412_v50, 4 }
 0x147   :  { %v407_v26 = vadd.f32 %v406_v49, %v405_v18  ;;  %v419_v16 = vsel %vm94_vm0, %v2577_v35, 0.0  ;;  %v390_v29 = vadd.f32 %v389_v12, %v388_v19  ;;  %v395_v6 = vadd.f32 %v394_v46, %v2540_v55 }
 0x148   :  { %v2585_v14 = vpop.eup %2136  ;;  %v401_v30 = vrot.slane %v400_v15, 2  ;;  %v414_v38 = vadd.f32 %v413_v23, %v412_v50  ;;  %v420_v42 = vrot.slane %v419_v16, 4  ;;  %2144 = vrcp.f32 %v376_v22  ;;  %v2603_v22 = vpop.permute.xlu1 %486 }
 0x149   :  { %v2587_v52 = vpop.eup %2138  ;;  %v472_v21 = vmul.f32 %v2125_v4, %v2494_v25  ;;  %v408_v9 = vrot.slane %v407_v26, 2  ;;  %v426_v31 = vsel %vm94_vm0, %v2585_v14, 0.0  ;;  %2146 = vrcp.f32 %v383_v34 }
 0x14a   :  { %v402_v58 = vadd.f32 %v401_v30, %v400_v15  ;;  %v415_v37 = vrot.slane %v414_v38, 2  ;;  %v421_v56 = vadd.f32 %v420_v42, %v419_v16  ;;  %v427_v57 = vrot.slane %v426_v31, 4 }
 0x14b   :  { %v2592_v55 = vpop.eup %2140  ;;  %v409_v61 = vadd.f32 %v408_v9, %v407_v26  ;;  %v433_v62 = vsel %vm94_vm0, %v2587_v52, 0.0  ;;  %v396_v11 = vrot.slane %v395_v6, 1  ;;  %2148 = vrcp.f32 %v390_v29 }
 0x14c   :  { %v2596_v63 = vpop.eup %2142  ;;  %v403_v25 = vrot.slane %v402_v58, 1  ;;  %v416_v0 = vadd.f32 %v415_v37, %v414_v38  ;;  %v422_v2 = vrot.slane %v421_v56, 2  ;;  %v428_v3 = vadd.f32 %v427_v57, %v426_v31 }
 0x14d   :  { %v410_v4 = vrot.slane %v409_v61, 1  ;;  %v434_v5 = vrot.slane %v433_v62, 4  ;;  %v440_v43 = vsel %vm94_vm0, %v2592_v55, 0.0  ;;  %v447_v13 = vsel %vm94_vm0, %v2596_v63, 0.0 }
 0x14e   :  { %v2145_v44 = vpop.eup %2144  ;;  %v404_v45 = vadd.f32 %v403_v25, %v402_v58  ;;  %v417_v24 = vrot.slane %v416_v0, 1  ;;  %v423_v39 = vadd.f32 %v422_v2, %v421_v56  ;;  %v429_v32 = vrot.slane %v428_v3, 2 }
 0x14f   :  { %v2147_v53 = vpop.eup %2146  ;;  %v411_v19 = vadd.f32 %v410_v4, %v409_v61  ;;  %v435_v59 = vadd.f32 %v434_v5, %v433_v62  ;;  %v441_v46 = vrot.slane %v440_v43, 4  ;;  %v448_v17 = vrot.slane %v447_v13, 4 }
 0x150   :  { %v424_v40 = vrot.slane %v423_v39, 1  ;;  %v430_v12 = vadd.f32 %v429_v32, %v428_v3  ;;  %v397_v51 = vadd.f32 %v396_v11, %v395_v6  ;;  %v473_v47 = vmul.f32 %v2133_v48, %v2500_v28 }
 0x151   :  { %v2149_v18 = vpop.eup %2148  ;;  %v418_v49 = vadd.f32 %v417_v24, %v416_v0  ;;  %v436_v50 = vrot.slane %v435_v59, 2  ;;  %v442_v34 = vadd.f32 %v441_v46, %v440_v43  ;;  %v449_v15 = vadd.f32 %v448_v17, %v447_v13 }
 0x152   :  { %v425_v23 = vadd.f32 %v424_v40, %v423_v39  ;;  %v431_v26 = vrot.slane %v430_v12, 1  ;;  %2150 = vrcp.f32 %v404_v45  ;;  %v492_v16 = vmul.f32 %v2603_v22, %v2561_v20 }
 0x153   :  { %v437_v29 = vadd.f32 %v436_v50, %v435_v59  ;;  %v443_v30 = vrot.slane %v442_v34, 2  ;;  %2152 = vrcp.f32 %v411_v19  ;;  %v450_v38 = vrot.slane %v449_v15, 2 }
 0x154   :  { %v432_v6 = vadd.f32 %v431_v26, %v430_v12  ;;  %2154 = vrcp.f32 %v397_v51  ;;  %v493_v28 = vmul.f32 %v2603_v22, %v2580_v36  ;;  %v494_v48 = vmul.f32 %v2603_v22, %v472_v21  ;;  %v489_v26 = vpop.permute.xlu1 %488 }
 0x155   :  { %2156 = vrcp.f32 %v418_v49  ;;  %v438_v42 = vrot.slane %v437_v29, 1  ;;  %v444_v9 = vadd.f32 %v443_v30, %v442_v34  ;;  %v451_v31 = vadd.f32 %v450_v38, %v449_v15 }
 0x156   :  { %2158 = vrcp.f32 %v425_v23  ;;  %v474_v58 = vmul.f32 %v2145_v44, %v2504_v33  ;;  %v475_v20 = vmul.f32 %v2147_v53, %v2508_v54  ;;  %v476_v62 = vmul.f32 %v2149_v18, %v2512_v60 }
 0x157   :  { %v439_v37 = vadd.f32 %v438_v42, %v437_v29  ;;  %v445_v56 = vrot.slane %v444_v9, 1  ;;  %v452_v57 = vrot.slane %v451_v31, 1  ;;  %2160 = vrcp.f32 %v432_v6 }
 0x158   :  { %v2151_v61 = vpop.eup %2150  ;;  %v495_v36 = vmul.f32 %v2603_v22, %v473_v47  ;;  %v508_v21 = vsel %vm94_vm0, %v492_v16, 0.0  ;;  %v515_v11 = vsel %vm94_vm0, %v493_v28, 0.0  ;;  %v522_v33 = vsel %vm94_vm0, %v494_v48, 0.0 }
 0x159   :  { %v2153_v25 = vpop.eup %2152  ;;  %v446_v0 = vadd.f32 %v445_v56, %v444_v9  ;;  %v453_v2 = vadd.f32 %v452_v57, %v451_v31  ;;  %2162 = vrcp.f32 %v439_v37  ;;  %v496_v3 = vmul.f32 %v2603_v22, %v474_v58 }
 0x15a   :  { %v2155_v54 = vpop.eup %2154  ;;  %v509_v4 = vrot.slane %v508_v21, 4  ;;  %v497_v60 = vmul.f32 %v2603_v22, %v475_v20  ;;  %v516_v43 = vrot.slane %v515_v11, 4  ;;  %v498_v44 = vmul.f32 %v2603_v22, %v476_v62 }
 0x15b   :  { %v2157_v5 = vpop.eup %2156  ;;  %2164 = vrcp.f32 %v446_v0  ;;  %v523_v24 = vrot.slane %v522_v33, 4  ;;  %v478_v32 = vmul.f32 %v2151_v61, %v2558_v27  ;;  %v477_v53 = vmul.f32 %v2155_v54, %v2516_v1 }
 0x15c   :  { %v2159_v13 = vpop.eup %2158  ;;  %2166 = vrcp.f32 %v453_v2  ;;  %v510_v45 = vadd.f32 %v509_v4, %v508_v21  ;;  %v517_v19 = vadd.f32 %v516_v43, %v515_v11  ;;  %v529_v59 = vsel %vm94_vm0, %v495_v36, 0.0 }
 0x15d   :  { %v2161_v39 = vpop.eup %2160  ;;  %v524_v17 = vadd.f32 %v523_v24, %v522_v33  ;;  %v530_v40 = vrot.slane %v529_v59, 4  ;;  %v536_v12 = vsel %vm94_vm0, %v496_v3, 0.0  ;;  %v479_v47 = vmul.f32 %v2153_v25, %v2565_v7 }
 0x15e   :  { %v511_v46 = vrot.slane %v510_v45, 2  ;;  %v518_v18 = vrot.slane %v517_v19, 2  ;;  %v537_v49 = vrot.slane %v536_v12, 4  ;;  %v543_v50 = vsel %vm94_vm0, %v497_v60, 0.0 }
 0x15f   :  { %v2163_v51 = vpop.eup %2162  ;;  %v480_v34 = vmul.f32 %v2157_v5, %v2569_v41  ;;  %v481_v27 = vmul.f32 %v2159_v13, %v2577_v35  ;;  %v482_v1 = vmul.f32 %v2161_v39, %v2585_v14  ;;  %v525_v30 = vrot.slane %v524_v17, 2 }
 0x160   :  { %v512_v15 = vadd.f32 %v511_v46, %v510_v45  ;;  %v483_v16 = vmul.f32 %v2163_v51, %v2587_v52  ;;  %v519_v29 = vadd.f32 %v518_v18, %v517_v19  ;;  %v544_v38 = vrot.slane %v543_v50, 4 }
 0x161   :  { %v2165_v23 = vpop.eup %2164  ;;  %v499_v7 = vmul.f32 %v2603_v22, %v477_v53  ;;  %v500_v28 = vmul.f32 %v489_v26, %v478_v32  ;;  %v531_v48 = vadd.f32 %v530_v40, %v529_v59  ;;  %v538_v42 = vadd.f32 %v537_v49, %v536_v12 }
 0x162   :  { %v2167_v6 = vpop.eup %2166  ;;  %v484_v41 = vmul.f32 %v2165_v23, %v2592_v55  ;;  %v501_v9 = vmul.f32 %v489_v26, %v479_v47  ;;  %v513_v35 = vrot.slane %v512_v15, 1  ;;  %v550_v14 = vsel %vm94_vm0, %v498_v44, 0.0 }
 0x163   :  { %v502_v31 = vmul.f32 %v489_v26, %v480_v34  ;;  %v503_v58 = vmul.f32 %v489_v26, %v481_v27  ;;  %v504_v20 = vmul.f32 %v489_v26, %v482_v1  ;;  %v545_v37 = vadd.f32 %v544_v38, %v543_v50 }
 0x164   :  { %v485_v52 = vmul.f32 %v2167_v6, %v2596_v63  ;;  %v505_v56 = vmul.f32 %v489_v26, %v483_v16  ;;  %v520_v57 = vrot.slane %v519_v29, 1  ;;  %v526_v61 = vadd.f32 %v525_v30, %v524_v17 }
 0x165   :  { %v532_v62 = vrot.slane %v531_v48, 2  ;;  %v539_v22 = vrot.slane %v538_v42, 2  ;;  %v551_v36 = vrot.slane %v550_v14, 4  ;;  %v557_v21 = vsel %vm94_vm0, %v499_v7, 0.0 }
 0x166   :  { %v506_v11 = vmul.f32 %v489_v26, %v484_v41  ;;  %v2635_v55 = vadd.f32 %v513_v35, %v512_v15  ;;  %v558_v25 = vrot.slane %v557_v21, 4  ;;  %v564_v0 = vsel %vm94_vm0, %v500_v28, 0.0 }
 0x167   :  { %v546_v2 = vrot.slane %v545_v37, 2  ;;  %v552_v33 = vadd.f32 %v551_v36, %v550_v14  ;;  %v565_v54 = vrot.slane %v564_v0, 4  ;;  %v571_v3 = vsel %vm94_vm0, %v501_v9, 0.0 }
 0x168   :  { %v507_v63 = vmul.f32 %v489_v26, %v485_v52  ;;  %v527_v4 = vrot.slane %v526_v61, 1  ;;  %v559_v5 = vadd.f32 %v558_v25, %v557_v21  ;;  %v572_v60 = vrot.slane %v571_v3, 4 }
 0x169   :  { %v2639_v43 = vadd.f32 %v520_v57, %v519_v29  ;;  %v553_v13 = vrot.slane %v552_v33, 2  ;;  %v566_v44 = vadd.f32 %v565_v54, %v564_v0  ;;  %v578_v45 = vsel %vm94_vm0, %v502_v31, 0.0 }
 0x16a   :  { %v533_v24 = vadd.f32 %v532_v62, %v531_v48  ;;  %v573_v39 = vadd.f32 %v572_v60, %v571_v3  ;;  %v579_v32 = vrot.slane %v578_v45, 4  ;;  %v585_v53 = vsel %vm94_vm0, %v503_v58, 0.0 }
 0x16b   :  { %v540_v19 = vadd.f32 %v539_v22, %v538_v42  ;;  %v547_v59 = vadd.f32 %v546_v2, %v545_v37  ;;  %v567_v46 = vrot.slane %v566_v44, 2  ;;  %v586_v17 = vrot.slane %v585_v53, 4 }
 0x16c   :  { %v560_v40 = vrot.slane %v559_v5, 2  ;;  %v574_v12 = vrot.slane %v573_v39, 2  ;;  %v580_v51 = vadd.f32 %v579_v32, %v578_v45  ;;  %v592_v47 = vsel %vm94_vm0, %v504_v20, 0.0 }
 0x16d   :  { %v2644_v18 = vadd.f32 %v527_v4, %v526_v61  ;;  %v554_v49 = vadd.f32 %v553_v13, %v552_v33  ;;  %v587_v50 = vadd.f32 %v586_v17, %v585_v53  ;;  %v593_v34 = vrot.slane %v592_v47, 4 }
 0x16e   :  { %v534_v27 = vrot.slane %v533_v24, 1  ;;  %v568_v1 = vadd.f32 %v567_v46, %v566_v44  ;;  %v581_v15 = vrot.slane %v580_v51, 2  ;;  %v599_v23 = vsel %vm94_vm0, %v505_v56, 0.0 }
 0x16f   :  { %v541_v26 = vrot.slane %v540_v19, 1  ;;  %v575_v16 = vadd.f32 %v574_v12, %v573_v39  ;;  %v588_v29 = vrot.slane %v587_v50, 2  ;;  %v594_v30 = vadd.f32 %v593_v34, %v592_v47 }
 0x170   :  { %v548_v38 = vrot.slane %v547_v59, 1  ;;  %v561_v6 = vadd.f32 %v560_v40, %v559_v5  ;;  %v582_v7 = vadd.f32 %v581_v15, %v580_v51  ;;  %v600_v28 = vrot.slane %v599_v23, 4 }
 0x171   :  { %v555_v48 = vrot.slane %v554_v49, 1  ;;  %v589_v42 = vadd.f32 %v588_v29, %v587_v50  ;;  %v595_v41 = vrot.slane %v594_v30, 2  ;;  %v606_v9 = vsel %vm94_vm0, %v506_v11, 0.0 }
 0x172   :  { %v535_v35 = vadd.f32 %v534_v27, %v533_v24  ;;  %v569_v14 = vrot.slane %v568_v1, 1  ;;  %v601_v31 = vadd.f32 %v600_v28, %v599_v23  ;;  %v607_v58 = vrot.slane %v606_v9, 4 }
 0x173   :  { %v576_v20 = vrot.slane %v575_v16, 1  ;;  %v583_v37 = vrot.slane %v582_v7, 1  ;;  %v596_v52 = vadd.f32 %v595_v41, %v594_v30  ;;  %v613_v56 = vsel %vm94_vm0, %v507_v63, 0.0 }
 0x174   :  { %v542_v57 = vadd.f32 %v541_v26, %v540_v19  ;;  %v602_v61 = vrot.slane %v601_v31, 2  ;;  %v608_v62 = vadd.f32 %v607_v58, %v606_v9  ;;  %v614_v22 = vrot.slane %v613_v56, 4 }
 0x175   :  { %v549_v36 = vadd.f32 %v548_v38, %v547_v59  ;;  %v556_v21 = vadd.f32 %v555_v48, %v554_v49  ;;  %v562_v25 = vrot.slane %v561_v6, 1  ;;  %v590_v0 = vrot.slane %v589_v42, 1 }
 0x176   :  { %v597_v2 = vrot.slane %v596_v52, 1  ;;  %v603_v33 = vadd.f32 %v602_v61, %v601_v31  ;;  %v609_v11 = vrot.slane %v608_v62, 2  ;;  %v615_v54 = vadd.f32 %v614_v22, %v613_v56 }
 0x177   :  { %v570_v3 = vadd.f32 %v569_v14, %v568_v1  ;;  %v577_v4 = vadd.f32 %v576_v20, %v575_v16  ;;  %v584_v5 = vadd.f32 %v583_v37, %v582_v7  ;;  %v620_v60 = vpack.c.bf16 %v2635_v55, %v2635_v55 }
 0x178   :  { %v604_v13 = vrot.slane %v603_v33, 1  ;;  %v610_v63 = vadd.f32 %v609_v11, %v608_v62  ;;  %v616_v44 = vrot.slane %v615_v54, 2  ;;  %v621_v45 = vpack.c.bf16 %v2639_v43, %v2639_v43 }
 0x179   :  { %v563_v24 = vadd.f32 %v562_v25, %v561_v6  ;;  %v591_v39 = vadd.f32 %v590_v0, %v589_v42  ;;  %v622_v32 = vpack.c.bf16 %v2644_v18, %v2644_v18  ;;  %v623_v53 = vpack.c.bf16 %v535_v35, %v535_v35 }
 0x17a   :  { %v598_v19 = vadd.f32 %v597_v2, %v596_v52  ;;  %v605_v59 = vadd.f32 %v604_v13, %v603_v33  ;;  %v611_v46 = vrot.slane %v610_v63, 1  ;;  %v617_v17 = vadd.f32 %v616_v44, %v615_v54 }
 0x17b   :  { %v624_v40 = vpack.c.bf16 %v542_v57, %v542_v57  ;;  %v625_v12 = vpack.c.bf16 %v549_v36, %v549_v36  ;;  %v628_v51 = vpack.c.bf16 %v570_v3, %v570_v3  ;;  %v629_v55 = vpack.c.bf16 %v577_v4, %v577_v4  ;;  %v74_v3 = vld [vmem:[#allocation5 + $0x21] ss:$0 sm:$0xff] }
 0x17c   :  { %v618_v47 = vrot.slane %v617_v17, 1  ;;  %v630_v49 = vpack.c.bf16 %v584_v5, %v584_v5  ;;  %v652_v50 = vunpack.c.l.b16 %v620_v60  ;;  %v653_v34 = vunpack.c.l.b16 %v621_v45 }
 0x17d   :  { %v626_v27 = vpack.c.bf16 %v556_v21, %v556_v21  ;;  %v627_v43 = vpack.c.bf16 %v563_v24, %v563_v24  ;;  %v631_v1 = vpack.c.bf16 %v591_v39, %v591_v39  ;;  %v654_v15 = vunpack.c.l.b16 %v622_v32 }
 0x17e   :  { %v612_v23 = vadd.f32 %v611_v46, %v610_v63  ;;  %v632_v26 = vpack.c.bf16 %v598_v19, %v598_v19  ;;  %v633_v18 = vpack.c.bf16 %v605_v59, %v605_v59  ;;  %v655_v16 = vunpack.c.l.b16 %v623_v53 }
 0x17f   :  { %v619_v29 = vadd.f32 %v618_v47, %v617_v17  ;;  %v660_v30 = vunpack.c.l.b16 %v628_v51  ;;  %v661_v38 = vunpack.c.l.b16 %v629_v55  ;;  %v656_v6 = vunpack.c.l.b16 %v624_v40 }
 0x180   :  { %v662_v7 = vunpack.c.l.b16 %v630_v49  ;;  %v669_v28 = vsel %vm668_vm1, %v653_v34, %v652_v50  ;;  %v634_v42 = vpack.c.bf16 %v612_v23, %v612_v23  ;;  %v657_v41 = vunpack.c.l.b16 %v625_v12 }
 0x181   :  { %v671_v48 = vsel %vm670_vm2, %v654_v15, %v669_v28  ;;  %v663_v9 = vunpack.c.l.b16 %v631_v1  ;;  %v635_v14 = vpack.c.bf16 %v619_v29, %v619_v29  ;;  %v682_v58 = vsel %vm668_vm1, %v661_v38, %v660_v30  ;;  %v1959_v1 = vld [vmem:[#allocation2 + $0x80] sm:$0xf] }
 0x182   :  { %v673_v35 = vsel %vm672_vm3, %v655_v16, %v671_v48  ;;  %v658_v20 = vunpack.c.l.b16 %v626_v27  ;;  %v664_v37 = vunpack.c.l.b16 %v632_v26  ;;  %v683_v56 = vsel %vm670_vm2, %v662_v7, %v682_v58  ;;  %v1963_v27 = vld [vmem:[#allocation2 + $0xa0] sm:$0xf]  ;;  %v2067_v26 = vld [vmem:[#allocation2 + $0x8c] sm:$0xf0] }
 0x183   :  { %v675_v31 = vsel %vm674_vm4, %v656_v6, %v673_v35  ;;  %v665_v57 = vunpack.c.l.b16 %v633_v18  ;;  %v684_v61 = vsel %vm672_vm3, %v663_v9, %v683_v56  ;;  %v666_v62 = vunpack.c.l.b16 %v634_v42 }
 0x184   :  { %v677_v52 = vsel %vm676_vm5, %v657_v41, %v675_v31  ;;  %v685_v36 = vsel %vm674_vm4, %v664_v37, %v684_v61  ;;  %v659_v21 = vunpack.c.l.b16 %v627_v43  ;;  %v667_v25 = vunpack.c.l.b16 %v635_v14  ;;  %v2068_v43 = vld [vmem:[#allocation2 + $0xac] sm:$0xf0] }
 0x185   :  { %v679_v22 = vsel %vm678_vm6, %v658_v20, %v677_v52  ;;  %v686_v0 = vsel %vm676_vm5, %v665_v57, %v685_v36  ;;  %v2344_v39 = vmov 32.0   ;;  %v1964_v23 = vor.u32 %v2068_v43, %v1963_v27  ;;  %v77_v57 = vld [vmem:[#allocation5 + $0x24] ss:$0 sm:$0xff]  ;;  %v78_v36 = vld [vmem:[#allocation5 + $0x25] ss:$0 sm:$0xff] }
 0x186   :  { %v687_v2 = vsel %vm678_vm6, %v666_v62, %v686_v0  ;;  %v681_v33 = vsel %vm680_vm7, %v659_v21, %v679_v22  ;;  %2168 = vrcp.f32 %v2344_v39  ;;  %v1960_v16 = vor.u32 %v2067_v26, %v1959_v1 }
 0x187   :  { %v688_v11 = vsel %vm680_vm7, %v667_v25, %v687_v2  ;;  %798 = vmatpush.bf16.msra.mxu2 %v1964_v23 }
 0x188   :  { %v689_v54 = vpack.c.b16 %v688_v11, %v681_v33  ;;  %v1980_v33 = vld [vmem:[#allocation2 + $0x120] sm:$0xf]  ;;  %v2072_v11 = vld [vmem:[#allocation2 + $0x12c] sm:$0xf0] }
 0x18a   :  { %1956 = vmatmul.msk.bf16.vlgmr.msra.gmra.mxu1 %vm94_vm0, %v689_v54  ;;  %v1981_v54 = vor.u32 %v2072_v11, %v1980_v33 }
 0x18b   :  { %799 = vmatpush.bf16.msra.mxu2 %v1960_v16 }
 0x18c   :  { %v2169_v32 = vpop.eup %2168  ;;  %841 = vmatpush.bf16.msra.mxu3 %v1981_v54  ;;  %v79_v54 = vld [vmem:[#allocation5 + $0x26] ss:$0 sm:$0xff] }
 0x18d   :  { %v728_v53 = vmul.f32 32.0, %v2169_v32  ;;  %vm732_vm8 = vweird.f32 %v2169_v32 }
 0x18f   :  { %v729_v19 = vsub.f32 1.0, %v728_v53 }
 0x191   :  { %v730_v59 = vmul.f32 %v2169_v32, %v729_v19 }
 0x193   :  { %v731_v46 = vadd.f32 %v2169_v32, %v730_v59 }
 0x195   :  { %v2674_v17 = vsel %vm732_vm8, %v2169_v32, %v731_v46  ;;  %v75_v32 = vld [vmem:[#allocation5 + $0x22] ss:$0 sm:$0xff] }
 0x207   :  { %v714_v4 = vpop.f32.mrf.mxu1 }
 0x208   :  { %v715_v5 = vadd.f32 %v714_v4, %v74_v3  ;;  %v2071_v4 = vld [vmem:[#allocation2 + $0x10c] sm:$0xf0] }
 0x20a   :  { %v719_v60 = vadd.f32 %v715_v5, %v2379_v8 }
 0x20c   :  { %v721_v13 = vsel %vm94_vm0, %v719_v60, 0.0 }
 0x20d   :  { %722 = vadd.xlane.f32.xlu2 %v721_v13  ;;  %v2070_v13 = vld [vmem:[#allocation2 + $0xec] sm:$0xf0] }
 0x20f   :  { %v716_v63 = vpop.f32.mrf.mxu1 }
 0x210   :  { %v717_v44 = vadd.f32 %v716_v63, %v74_v3  ;;  %v1976_v3 = vld [vmem:[#allocation2 + $0x100] sm:$0xf] }
 0x211   :  { %v1977_v5 = vor.u32 %v2071_v4, %v1976_v3 }
 0x212   :  { %v720_v45 = vadd.f32 %v717_v44, %v2381_v10  ;;  %v1968_v44 = vld [vmem:[#allocation2 + $0xc0] sm:$0xf] }
 0x213   :  { %842 = vmatpush.bf16.msra.mxu3 %v1977_v5 }
 0x214   :  { %v724_v24 = vsel %vm94_vm0, %v720_v45, 0.0 }
 0x215   :  { %725 = vadd.xlane.f32.xlu2 %v724_v24 }
 0x280   :  { %v723_v8 = vpop.xlane.xlu2 %722 }
 0x281   :  { %v734_v40 = vmul.f32 %v2674_v17, %v723_v8 }
 0x283   :  { %v736_v12 = vsub.f32 %v719_v60, %v734_v40  ;;  %v1972_v60 = vld [vmem:[#allocation2 + $0xe0] sm:$0xf] }
 0x284   :  { %v1973_v63 = vor.u32 %v2070_v13, %v1972_v60  ;;  %v80_v60 = vld [vmem:[#allocation5 + $0x27] ss:$0 sm:$0xff] }
 0x285   :  { %v738_v51 = vmul.f32 %v736_v12, %v736_v12 }
 0x286   :  { %843 = vmatpush.bf16.msra.mxu3 %v1973_v63 }
 0x287   :  { %v740_v10 = vsel %vm94_vm0, %v738_v51, 0.0 }
 0x288   :  { %741 = vadd.xlane.f32.xlu0 %v740_v10  ;;  %v726_v55 = vpop.xlane.xlu2 %725 }
 0x289   :  { %v735_v47 = vmul.f32 %v2674_v17, %v726_v55 }
 0x28b   :  { %v737_v49 = vsub.f32 %v720_v45, %v735_v47  ;;  %v2069_v45 = vld [vmem:[#allocation2 + $0xcc] sm:$0xf0] }
 0x28c   :  { %v1969_v24 = vor.u32 %v2069_v45, %v1968_v44 }
 0x28d   :  { %v739_v50 = vmul.f32 %v737_v49, %v737_v49 }
 0x28e   :  { %844 = vmatpush.bf16.msra.mxu3 %v1969_v24  ;;  %v921_v24 = vld [vmem:[#allocation5 + $0x40] ss:$0 sm:$0xff] }
 0x28f   :  { %v743_v34 = vsel %vm94_vm0, %v739_v50, 0.0 }
 0x290   :  { %744 = vadd.xlane.f32.xlu1 %v743_v34 }
 0x2fb   :  { %v742_v15 = vpop.xlane.xlu0 %741 }
 0x2fc   :  { %v746_v18 = vmul.f32 %v742_v15, %v2674_v17 }
 0x2fe   :  { %v748_v29 = vadd.f32 1e-05, %v746_v18 }
 0x300   :  { %2170 = vrsqrt.f32 %v748_v29  ;;  %vm756_vm10 = vweird.f32 %v748_v29 }
 0x303   :  { %v745_v30 = vpop.xlane.xlu1 %744 }
 0x304   :  { %v747_v38 = vmul.f32 %v745_v30, %v2674_v17 }
 0x306   :  { %v2171_v6 = vpop.eup %2170  ;;  %v749_v7 = vadd.f32 1e-05, %v747_v38 }
 0x307   :  { %v751_v28 = vmul.f32 %v2171_v6, %v748_v29  ;;  %vm757_vm9 = vweird.f32 %v2171_v6 }
 0x308   :  { %2172 = vrsqrt.f32 %v749_v7  ;;  %vm758_vm11 = vmor %vm756_vm10, %vm757_vm9  ;;  %vm766_vm13 = vweird.f32 %v749_v7 }
 0x309   :  { %v752_v48 = vmul.f32 %v2171_v6, %v751_v28  ;;  %v1985_v28 = vld [vmem:[#allocation2 + $0x140] sm:$0xf] }
 0x30b   :  { %v753_v42 = vmul.f32 0.5, %v752_v48 }
 0x30d   :  { %v754_v41 = vsub.f32 1.5, %v753_v42 }
 0x30e   :  { %v2173_v9 = vpop.eup %2172 }
 0x30f   :  { %v755_v35 = vmul.f32 %v2171_v6, %v754_v41  ;;  %v761_v14 = vmul.f32 %v2173_v9, %v749_v7  ;;  %vm767_vm12 = vweird.f32 %v2173_v9  ;;  %v2074_v7 = vld [vmem:[#allocation2 + $0x16c] sm:$0xf0] }
 0x310   :  { %vm768_vm14 = vmor %vm766_vm13, %vm767_vm12  ;;  %v2073_v41 = vld [vmem:[#allocation2 + $0x14c] sm:$0xf0] }
 0x311   :  { %v762_v31 = vmul.f32 %v2173_v9, %v761_v14  ;;  %v759_v58 = vsel %vm758_vm11, %v2171_v6, %v755_v35  ;;  %v1989_v6 = vld [vmem:[#allocation2 + $0x160] sm:$0xf]  ;;  %v1986_v35 = vor.u32 %v2073_v41, %v1985_v28 }
 0x312   :  { %v770_v52 = vmul.f32 %v759_v58, %v736_v12  ;;  %v76_v12 = vld [vmem:[#allocation5 + $0x23] ss:$0 sm:$0xff]  ;;  %v1990_v42 = vor.u32 %v2074_v7, %v1989_v6 }
 0x313   :  { %v763_v20 = vmul.f32 0.5, %v762_v31 }
 0x314   :  { %v772_v22 = vmul.f32 %v770_v52, %v77_v57  ;;  %951 = vmatpush.bf16.msrb.mxu0 %v1990_v42 }
 0x315   :  { %v764_v37 = vsub.f32 1.5, %v763_v20 }
 0x316   :  { %v774_v25 = vadd.f32 %v772_v22, %v78_v36 }
 0x317   :  { %v765_v56 = vmul.f32 %v2173_v9, %v764_v37 }
 0x318   :  { %952 = vmatpush.bf16.msrb.mxu0 %v1986_v35 }
 0x319   :  { %v769_v61 = vsel %vm768_vm14, %v2173_v9, %v765_v56 }
 0x31a   :  { %v771_v62 = vmul.f32 %v769_v61, %v737_v49 }
 0x31c   :  { %v773_v21 = vmul.f32 %v771_v62, %v77_v57 }
 0x31e   :  { %v775_v0 = vadd.f32 %v773_v21, %v78_v36 }
 0x320   :  { %v776_v2 = vpack.c.bf16 %v775_v0, %v774_v25 }
 0x322   :  { %1965 = vmatmul.msk.bf16.vlgmr.msra.gmra.mxu2 %vm94_vm0, %v776_v2 }
 0x3a5   :  { %v801_v39 = vpop.f32.mrf.mxu2 }
 0x3a6   :  { %v802_v53 = vadd.f32 %v801_v39, %v75_v32 }
 0x3a8   :  { %v806_v46 = vmax.f32 %v802_v53, 0.0 }
 0x3ad   :  { %v803_v19 = vpop.f32.mrf.mxu2 }
 0x3ae   :  { %v804_v59 = vadd.f32 %v803_v19, %v75_v32 }
 0x3b0   :  { %v807_v8 = vmax.f32 %v804_v59, 0.0 }
 0x3b2   :  { %v808_v40 = vpack.c.bf16 %v807_v8, %v806_v46 }
 0x3b4   :  { %1982 = vmatmul.msk.bf16.vlgmr.msra.gmra.mxu3 %vm833_vm15, %v808_v40 }
 0x437   :  { %v846_v51 = vpop.f32.mrf.mxu3 }
 0x438   :  { %v847_v10 = vadd.f32 %v846_v51, %v76_v12 }
 0x43a   :  { %v851_v55 = vadd.f32 %v847_v10, %v774_v25 }
 0x43c   :  { %v853_v47 = vsel %vm94_vm0, %v851_v55, 0.0 }
 0x43d   :  { %854 = vadd.xlane.f32.xlu2 %v853_v47 }
 0x43f   :  { %v848_v49 = vpop.f32.mrf.mxu3 }
 0x440   :  { %v849_v50 = vadd.f32 %v848_v49, %v76_v12 }
 0x442   :  { %v852_v34 = vadd.f32 %v849_v50, %v775_v0 }
 0x444   :  { %v856_v27 = vsel %vm94_vm0, %v852_v34, 0.0 }
 0x445   :  { %857 = vadd.xlane.f32.xlu2 %v856_v27 }
 0x4b0   :  { %v855_v43 = vpop.xlane.xlu2 %854 }
 0x4b1   :  { %v859_v1 = vmul.f32 %v855_v43, %v2674_v17 }
 0x4b3   :  { %v861_v15 = vsub.f32 %v851_v55, %v859_v1 }
 0x4b5   :  { %v863_v23 = vmul.f32 %v861_v15, %v861_v15 }
 0x4b7   :  { %v865_v26 = vsel %vm94_vm0, %v863_v23, 0.0 }
 0x4b8   :  { %866 = vadd.xlane.f32.xlu2 %v865_v26  ;;  %v858_v18 = vpop.xlane.xlu2 %857 }
 0x4b9   :  { %v860_v16 = vmul.f32 %v858_v18, %v2674_v17 }
 0x4bb   :  { %v862_v29 = vsub.f32 %v852_v34, %v860_v16 }
 0x4bd   :  { %v864_v30 = vmul.f32 %v862_v29, %v862_v29 }
 0x4bf   :  { %v868_v38 = vsel %vm94_vm0, %v864_v30, 0.0 }
 0x4c0   :  { %869 = vadd.xlane.f32.xlu2 %v868_v38 }
 0x52b   :  { %v867_v48 = vpop.xlane.xlu2 %866 }
 0x52c   :  { %v871_v9 = vmul.f32 %v867_v48, %v2674_v17 }
 0x52e   :  { %v873_v14 = vadd.f32 1e-05, %v871_v9 }
 0x530   :  { %2174 = vrsqrt.f32 %v873_v14  ;;  %vm881_vm9 = vweird.f32 %v873_v14 }
 0x533   :  { %v870_v31 = vpop.xlane.xlu2 %869 }
 0x534   :  { %v872_v58 = vmul.f32 %v870_v31, %v2674_v17 }
 0x536   :  { %v2175_v20 = vpop.eup %2174  ;;  %v874_v37 = vadd.f32 1e-05, %v872_v58 }
 0x537   :  { %v876_v52 = vmul.f32 %v2175_v20, %v873_v14  ;;  %vm882_vm8 = vweird.f32 %v2175_v20 }
 0x538   :  { %2176 = vrsqrt.f32 %v874_v37  ;;  %vm883_vm10 = vmor %vm881_vm9, %vm882_vm8  ;;  %vm891_vm12 = vweird.f32 %v874_v37 }
 0x539   :  { %v877_v56 = vmul.f32 %v2175_v20, %v876_v52 }
 0x53b   :  { %v878_v57 = vmul.f32 0.5, %v877_v56 }
 0x53d   :  { %v879_v61 = vsub.f32 1.5, %v878_v57 }
 0x53e   :  { %v2177_v62 = vpop.eup %2176 }
 0x53f   :  { %v880_v22 = vmul.f32 %v2175_v20, %v879_v61  ;;  %v886_v36 = vmul.f32 %v2177_v62, %v874_v37  ;;  %vm892_vm11 = vweird.f32 %v2177_v62 }
 0x540   :  { %vm893_vm13 = vmor %vm891_vm12, %vm892_vm11 }
 0x541   :  { %v887_v21 = vmul.f32 %v2177_v62, %v886_v36  ;;  %v884_v25 = vsel %vm883_vm10, %v2175_v20, %v880_v22 }
 0x542   :  { %v895_v33 = vmul.f32 %v884_v25, %v861_v15 }
 0x543   :  { %v888_v0 = vmul.f32 0.5, %v887_v21 }
 0x544   :  { %v897_v5 = vmul.f32 %v895_v33, %v79_v54 }
 0x545   :  { %v889_v2 = vsub.f32 1.5, %v888_v0 }
 0x546   :  { %v2692_v63 = vadd.f32 %v897_v5, %v80_v60 }
 0x547   :  { %v890_v11 = vmul.f32 %v2177_v62, %v889_v2 }
 0x549   :  { %v894_v3 = vsel %vm893_vm13, %v2177_v62, %v890_v11 }
 0x54a   :  { %v896_v4 = vmul.f32 %v894_v3, %v862_v29 }
 0x54c   :  { %v898_v13 = vmul.f32 %v896_v4, %v79_v54 }
 0x54e   :  { %v2694_v44 = vadd.f32 %v898_v13, %v80_v60 }
 0x550   :  { %v929_v45 = vpack.c.bf16 %v2694_v44, %v2692_v63 }
 0x552   :  { %1991 = vmatmul.msk.bf16.vlgmr.msrb.gmra.mxu0 %vm94_vm0, %v929_v45 }
 0x5cf   :  { %v954_v39 = vpop.f32.mrf.mxu0 }
 0x5d0   :  { %v955_v32 = vadd.f32 %v954_v39, %v921_v24 }
 0x5d2   :  { %1333 = vrot.lane.b32.xlu1 %v955_v32, %s2342_s28  ;;  %1007 = vrot.lane.b32.xlu2 %v955_v32, %s2343_s0  ;;  %v961_v59 = vrot.slane %v955_v32, 1  ;;  %v962_v46 = vrot.slane %v955_v32, 2  ;;  %v963_v8 = vrot.slane %v955_v32, 3  ;;  %v964_v40 = vrot.slane %v955_v32, 4 }
 0x5d3   :  { %v965_v12 = vrot.slane %v955_v32, 5  ;;  %v966_v51 = vrot.slane %v955_v32, 6  ;;  %v967_v10 = vrot.slane %v955_v32, 7  ;;  %v975_v55 = vperm.slane %v955_v32, 0 }
 0x5d4   :  { %v976_v47 = vperm.slane %v961_v59, 0  ;;  %v977_v49 = vperm.slane %v962_v46, 0  ;;  %v978_v50 = vperm.slane %v963_v8, 0  ;;  %v979_v27 = vperm.slane %v964_v40, 0 }
 0x5d5   :  { %v980_v43 = vperm.slane %v965_v12, 0  ;;  %v981_v1 = vperm.slane %v966_v51, 0  ;;  %v982_v15 = vperm.slane %v967_v10, 0 }
 0x5d7   :  { %v956_v53 = vpop.f32.mrf.mxu0 }
 0x5d8   :  { %v2701_v19 = vadd.f32 %v956_v53, %v921_v24 }
 0x5da   :  { %1009 = vrot.lane.b32.xlu0 %v2701_v19, %s2343_s0  ;;  %1335 = vrot.lane.b32.xlu2 %v2701_v19, %s2342_s28 }
 0x62c   :  { %v1008_v34 = vpop.permute.xlu2 %1007 }
 0x62d   :  { %v2707_v23 = vmul.f32 %v1008_v34, %v975_v55  ;;  %v2709_v26 = vmul.f32 %v1008_v34, %v976_v47  ;;  %v2711_v18 = vmul.f32 %v1008_v34, %v977_v49  ;;  %v2713_v16 = vmul.f32 %v1008_v34, %v978_v50 }
 0x62e   :  { %v2715_v29 = vmul.f32 %v1008_v34, %v979_v27  ;;  %v2717_v30 = vmul.f32 %v1008_v34, %v980_v43  ;;  %v2719_v38 = vmul.f32 %v1008_v34, %v981_v1  ;;  %v2721_v6 = vmul.f32 %v1008_v34, %v982_v15 }
 0x62f   :  { %v1029_v7 = vsel %vm94_vm0, %v2707_v23, -inf  ;;  %v1036_v28 = vsel %vm94_vm0, %v2709_v26, -inf  ;;  %v1043_v48 = vsel %vm94_vm0, %v2711_v18, -inf  ;;  %v1050_v42 = vsel %vm94_vm0, %v2713_v16, -inf }
 0x630   :  { %v1030_v41 = vrot.slane %v1029_v7, 4  ;;  %v1037_v9 = vrot.slane %v1036_v28, 4  ;;  %v1044_v35 = vrot.slane %v1043_v48, 4  ;;  %v1051_v14 = vrot.slane %v1050_v42, 4 }
 0x631   :  { %v1057_v31 = vsel %vm94_vm0, %v2715_v29, -inf  ;;  %v1064_v58 = vsel %vm94_vm0, %v2717_v30, -inf  ;;  %v1071_v20 = vsel %vm94_vm0, %v2719_v38, -inf  ;;  %v1078_v37 = vsel %vm94_vm0, %v2721_v6, -inf }
 0x632   :  { %v1031_v52 = vmax.f32 %v1029_v7, %v1030_v41  ;;  %v1038_v56 = vmax.f32 %v1036_v28, %v1037_v9  ;;  %v1045_v57 = vmax.f32 %v1043_v48, %v1044_v35  ;;  %v1052_v61 = vmax.f32 %v1050_v42, %v1051_v14 }
 0x633   :  { %v1058_v62 = vrot.slane %v1057_v31, 4  ;;  %v1065_v22 = vrot.slane %v1064_v58, 4  ;;  %v1072_v36 = vrot.slane %v1071_v20, 4  ;;  %v1079_v21 = vrot.slane %v1078_v37, 4 }
 0x634   :  { %v1032_v25 = vrot.slane %v1031_v52, 2  ;;  %v1039_v0 = vrot.slane %v1038_v56, 2  ;;  %v1046_v2 = vrot.slane %v1045_v57, 2  ;;  %v1053_v33 = vrot.slane %v1052_v61, 2 }
 0x635   :  { %v1059_v11 = vmax.f32 %v1057_v31, %v1058_v62  ;;  %v1066_v54 = vmax.f32 %v1064_v58, %v1065_v22  ;;  %v1073_v3 = vmax.f32 %v1071_v20, %v1072_v36  ;;  %v1080_v4 = vmax.f32 %v1078_v37, %v1079_v21 }
 0x636   :  { %v1033_v5 = vmax.f32 %v1031_v52, %v1032_v25  ;;  %v1040_v60 = vmax.f32 %v1038_v56, %v1039_v0  ;;  %v1047_v13 = vmax.f32 %v1045_v57, %v1046_v2  ;;  %v1054_v45 = vmax.f32 %v1052_v61, %v1053_v33 }
 0x637   :  { %v1060_v24 = vrot.slane %v1059_v11, 2  ;;  %v1067_v39 = vrot.slane %v1066_v54, 2  ;;  %v1074_v32 = vrot.slane %v1073_v3, 2  ;;  %v1081_v53 = vrot.slane %v1080_v4, 2 }
 0x638   :  { %v1034_v59 = vrot.slane %v1033_v5, 1  ;;  %v1041_v46 = vrot.slane %v1040_v60, 1  ;;  %v1048_v8 = vrot.slane %v1047_v13, 1  ;;  %v1055_v40 = vrot.slane %v1054_v45, 1 }
 0x639   :  { %v1061_v12 = vmax.f32 %v1059_v11, %v1060_v24  ;;  %v1068_v51 = vmax.f32 %v1066_v54, %v1067_v39  ;;  %v1075_v10 = vmax.f32 %v1073_v3, %v1074_v32  ;;  %v1082_v55 = vmax.f32 %v1080_v4, %v1081_v53 }
 0x63a   :  { %v1035_v47 = vmax.f32 %v1033_v5, %v1034_v59  ;;  %v1042_v49 = vmax.f32 %v1040_v60, %v1041_v46  ;;  %v1049_v50 = vmax.f32 %v1047_v13, %v1048_v8  ;;  %v1056_v34 = vmax.f32 %v1054_v45, %v1055_v40 }
 0x63b   :  { %v1062_v27 = vrot.slane %v1061_v12, 1  ;;  %v1069_v43 = vrot.slane %v1068_v51, 1  ;;  %v1076_v1 = vrot.slane %v1075_v10, 1  ;;  %v1083_v15 = vrot.slane %v1082_v55, 1 }
 0x63c   :  { %v1141_v7 = vsub.f32 %v2707_v23, %v1035_v47  ;;  %v1142_v28 = vsub.f32 %v2709_v26, %v1042_v49  ;;  %v1143_v48 = vsub.f32 %v2711_v18, %v1049_v50  ;;  %v1144_v42 = vsub.f32 %v2713_v16, %v1056_v34 }
 0x63d   :  { %v1063_v41 = vmax.f32 %v1061_v12, %v1062_v27  ;;  %v1070_v9 = vmax.f32 %v1068_v51, %v1069_v43  ;;  %v1077_v35 = vmax.f32 %v1075_v10, %v1076_v1  ;;  %v1084_v14 = vmax.f32 %v1082_v55, %v1083_v15 }
 0x63e   :  { %v1157_v31 = vmul.f32 1.442695, %v1141_v7  ;;  %v1159_v58 = vmul.f32 1.442695, %v1142_v28  ;;  %v1161_v20 = vmul.f32 1.442695, %v1143_v48 }
 0x63f   :  { %v1145_v37 = vsub.f32 %v2715_v29, %v1063_v41  ;;  %v1146_v52 = vsub.f32 %v2717_v30, %v1070_v9  ;;  %v1147_v56 = vsub.f32 %v2719_v38, %v1077_v35  ;;  %v1148_v23 = vsub.f32 %v2721_v6, %v1084_v14 }
 0x640   :  { %2178 = vpow2.f32 %v1157_v31  ;;  %v1163_v26 = vmul.f32 1.442695, %v1144_v42  ;;  %v968_v62 = vrot.slane %v2701_v19, 1  ;;  %v969_v29 = vrot.slane %v2701_v19, 2 }
 0x641   :  { %2180 = vpow2.f32 %v1159_v58  ;;  %v1165_v18 = vmul.f32 1.442695, %v1145_v37  ;;  %v1167_v16 = vmul.f32 1.442695, %v1146_v52  ;;  %v1169_v57 = vmul.f32 1.442695, %v1147_v56 }
 0x642   :  { %2182 = vpow2.f32 %v1161_v20  ;;  %v1171_v61 = vmul.f32 1.442695, %v1148_v23  ;;  %v970_v38 = vrot.slane %v2701_v19, 3  ;;  %v971_v6 = vrot.slane %v2701_v19, 4 }
 0x643   :  { %2184 = vpow2.f32 %v1163_v26  ;;  %v972_v21 = vrot.slane %v2701_v19, 5  ;;  %v973_v25 = vrot.slane %v2701_v19, 6  ;;  %v974_v11 = vrot.slane %v2701_v19, 7 }
 0x644   :  { %2186 = vpow2.f32 %v1165_v18  ;;  %v983_v54 = vperm.slane %v2701_v19, 0  ;;  %v984_v60 = vperm.slane %v968_v62, 0  ;;  %v2769_v13 = vperm.slane %v969_v29, 0 }
 0x645   :  { %2188 = vpow2.f32 %v1167_v16  ;;  %v2775_v53 = vperm.slane %v970_v38, 0  ;;  %v987_v12 = vperm.slane %v971_v6, 0 }
 0x646   :  { %v2749_v30 = vpop.eup %2178  ;;  %2190 = vpow2.f32 %v1169_v57 }
 0x647   :  { %v2753_v22 = vpop.eup %2180  ;;  %2192 = vpow2.f32 %v1171_v61  ;;  %v1189_v36 = vsel %vm94_vm0, %v2749_v30, 0.0 }
 0x648   :  { %v2759_v0 = vpop.eup %2182  ;;  %v1190_v2 = vrot.slane %v1189_v36, 4  ;;  %v1196_v33 = vsel %vm94_vm0, %v2753_v22, 0.0 }
 0x649   :  { %v2765_v3 = vpop.eup %2184  ;;  %v1197_v4 = vrot.slane %v1196_v33, 4  ;;  %v1203_v5 = vsel %vm94_vm0, %v2759_v0, 0.0 }
 0x64a   :  { %v2771_v45 = vpop.eup %2186  ;;  %v1191_v24 = vadd.f32 %v1190_v2, %v1189_v36  ;;  %v1204_v39 = vrot.slane %v1203_v5, 4  ;;  %v1210_v32 = vsel %vm94_vm0, %v2765_v3, 0.0 }
 0x64b   :  { %v2777_v59 = vpop.eup %2188  ;;  %v1198_v46 = vadd.f32 %v1197_v4, %v1196_v33  ;;  %v1211_v8 = vrot.slane %v1210_v32, 4  ;;  %v1217_v40 = vsel %vm94_vm0, %v2771_v45, 0.0 }
 0x64c   :  { %v2781_v51 = vpop.eup %2190  ;;  %v1192_v10 = vrot.slane %v1191_v24, 2  ;;  %v1205_v55 = vadd.f32 %v1204_v39, %v1203_v5  ;;  %v1218_v47 = vrot.slane %v1217_v40, 4  ;;  %v1224_v49 = vsel %vm94_vm0, %v2777_v59, 0.0  ;;  %v1010_v6 = vpop.permute.xlu0 %1009 }
 0x64d   :  { %v2785_v50 = vpop.eup %2192  ;;  %v1199_v34 = vrot.slane %v1198_v46, 2  ;;  %v1212_v27 = vadd.f32 %v1211_v8, %v1210_v32  ;;  %v1225_v43 = vrot.slane %v1224_v49, 4  ;;  %v1231_v1 = vsel %vm94_vm0, %v2781_v51, 0.0 }
 0x64e   :  { %v1206_v15 = vrot.slane %v1205_v55, 2  ;;  %v1219_v7 = vadd.f32 %v1218_v47, %v1217_v40  ;;  %v1232_v28 = vrot.slane %v1231_v1, 4  ;;  %v1238_v48 = vsel %vm94_vm0, %v2785_v50, 0.0 }
 0x64f   :  { %v1213_v42 = vrot.slane %v1212_v27, 2  ;;  %v1226_v41 = vadd.f32 %v1225_v43, %v1224_v49  ;;  %v1239_v9 = vrot.slane %v1238_v48, 4  ;;  %v1193_v35 = vadd.f32 %v1192_v10, %v1191_v24 }
 0x650   :  { %v1220_v14 = vrot.slane %v1219_v7, 2  ;;  %v1233_v31 = vadd.f32 %v1232_v28, %v1231_v1  ;;  %v1200_v58 = vadd.f32 %v1199_v34, %v1198_v46  ;;  %v1207_v20 = vadd.f32 %v1206_v15, %v1205_v55 }
 0x651   :  { %v1227_v37 = vrot.slane %v1226_v41, 2  ;;  %v1240_v52 = vadd.f32 %v1239_v9, %v1238_v48  ;;  %v1194_v56 = vrot.slane %v1193_v35, 1  ;;  %v1214_v23 = vadd.f32 %v1213_v42, %v1212_v27  ;;  %v1334_v48 = vpop.permute.xlu1 %1333 }
 0x652   :  { %v1234_v26 = vrot.slane %v1233_v31, 2  ;;  %v1201_v18 = vrot.slane %v1200_v58, 1  ;;  %v1208_v16 = vrot.slane %v1207_v20, 1  ;;  %v1221_v57 = vadd.f32 %v1220_v14, %v1219_v7 }
 0x653   :  { %v1241_v61 = vrot.slane %v1240_v52, 2  ;;  %v1195_v62 = vadd.f32 %v1194_v56, %v1193_v35  ;;  %v1215_v29 = vrot.slane %v1214_v23, 1  ;;  %v1228_v38 = vadd.f32 %v1227_v37, %v1226_v41 }
 0x654   :  { %v1202_v36 = vadd.f32 %v1201_v18, %v1200_v58  ;;  %v1209_v2 = vadd.f32 %v1208_v16, %v1207_v20  ;;  %v1222_v33 = vrot.slane %v1221_v57, 1  ;;  %v1235_v4 = vadd.f32 %v1234_v26, %v1233_v31 }
 0x655   :  { %v1216_v5 = vadd.f32 %v1215_v29, %v1214_v23  ;;  %v1229_v24 = vrot.slane %v1228_v38, 1  ;;  %v1242_v39 = vadd.f32 %v1241_v61, %v1240_v52  ;;  %2194 = vrcp.f32 %v1195_v62 }
 0x656   :  { %v1223_v32 = vadd.f32 %v1222_v33, %v1221_v57  ;;  %v1236_v46 = vrot.slane %v1235_v4, 1  ;;  %2196 = vrcp.f32 %v1202_v36  ;;  %v2791_v8 = vmul.f32 %v1010_v6, %v983_v54 }
 0x657   :  { %v1230_v40 = vadd.f32 %v1229_v24, %v1228_v38  ;;  %v1243_v10 = vrot.slane %v1242_v39, 1  ;;  %2198 = vrcp.f32 %v1209_v2  ;;  %v2793_v55 = vmul.f32 %v1010_v6, %v984_v60 }
 0x658   :  { %v1237_v47 = vadd.f32 %v1236_v46, %v1235_v4  ;;  %2200 = vrcp.f32 %v1216_v5  ;;  %v988_v49 = vperm.slane %v972_v21, 0  ;;  %v2798_v34 = vmul.f32 %v1010_v6, %v2769_v13 }
 0x659   :  { %v1244_v27 = vadd.f32 %v1243_v10, %v1242_v39  ;;  %2202 = vrcp.f32 %v1223_v32  ;;  %v989_v43 = vperm.slane %v973_v25, 0  ;;  %v990_v54 = vperm.slane %v974_v11, 0 }
 0x65a   :  { %2204 = vrcp.f32 %v1230_v40  ;;  %v2805_v60 = vmul.f32 %v1010_v6, %v2775_v53  ;;  %v2807_v1 = vmul.f32 %v1010_v6, %v987_v12  ;;  %v1085_v21 = vsel %vm94_vm0, %v2791_v8, -inf }
 0x65b   :  { %v2195_v15 = vpop.eup %2194  ;;  %2206 = vrcp.f32 %v1237_v47  ;;  %v1086_v13 = vrot.slane %v1085_v21, 4  ;;  %v1092_v7 = vsel %vm94_vm0, %v2793_v55, -inf  ;;  %v1099_v25 = vsel %vm94_vm0, %v2798_v34, -inf }
 0x65c   :  { %v2197_v19 = vpop.eup %2196  ;;  %2208 = vrcp.f32 %v1244_v27  ;;  %v1317_v11 = vmul.f32 %v2195_v15, %v2749_v30  ;;  %v1093_v53 = vrot.slane %v1092_v7, 4  ;;  %v1100_v28 = vrot.slane %v1099_v25, 4 }
 0x65d   :  { %v2199_v12 = vpop.eup %2198  ;;  %v1318_v42 = vmul.f32 %v2197_v19, %v2753_v22  ;;  %v2817_v41 = vmul.f32 %v1010_v6, %v988_v49  ;;  %v2819_v9 = vmul.f32 %v1010_v6, %v989_v43  ;;  %v1087_v35 = vmax.f32 %v1085_v21, %v1086_v13 }
 0x65e   :  { %v2201_v14 = vpop.eup %2200  ;;  %v1319_v31 = vmul.f32 %v2199_v12, %v2759_v0  ;;  %v1339_v58 = vmul.f32 %v1334_v48, %v1317_v11  ;;  %v2822_v20 = vmul.f32 %v1010_v6, %v990_v54  ;;  %v1106_v30 = vsel %vm94_vm0, %v2805_v60, -inf }
 0x65f   :  { %v2203_v37 = vpop.eup %2202  ;;  %v1320_v52 = vmul.f32 %v2201_v14, %v2765_v3  ;;  %v1340_v56 = vmul.f32 %v1334_v48, %v1318_v42  ;;  %v1094_v23 = vmax.f32 %v1092_v7, %v1093_v53  ;;  %v1101_v22 = vmax.f32 %v1099_v25, %v1100_v28 }
 0x660   :  { %v2205_v26 = vpop.eup %2204  ;;  %v1321_v18 = vmul.f32 %v2203_v37, %v2771_v45  ;;  %v1341_v16 = vmul.f32 %v1334_v48, %v1319_v31  ;;  %v1355_v57 = vsel %vm94_vm0, %v1339_v58, 0.0  ;;  %v1088_v61 = vrot.slane %v1087_v35, 2 }
 0x661   :  { %v2207_v0 = vpop.eup %2206  ;;  %v1322_v62 = vmul.f32 %v2205_v26, %v2777_v59  ;;  %v1342_v29 = vmul.f32 %v1334_v48, %v1320_v52  ;;  %v1356_v38 = vrot.slane %v1355_v57, 4  ;;  %v1362_v6 = vsel %vm94_vm0, %v1340_v56, 0.0 }
 0x662   :  { %v2209_v36 = vpop.eup %2208  ;;  %v1343_v2 = vmul.f32 %v1334_v48, %v1321_v18  ;;  %v1363_v3 = vrot.slane %v1362_v6, 4  ;;  %v1369_v33 = vsel %vm94_vm0, %v1341_v16, 0.0  ;;  %v1107_v4 = vrot.slane %v1106_v30, 4 }
 0x663   :  { %v1344_v5 = vmul.f32 %v1334_v48, %v1322_v62  ;;  %v1357_v24 = vadd.f32 %v1356_v38, %v1355_v57  ;;  %v1370_v45 = vrot.slane %v1369_v33, 4  ;;  %v1095_v39 = vrot.slane %v1094_v23, 2 }
 0x664   :  { %v1323_v32 = vmul.f32 %v2207_v0, %v2781_v51  ;;  %v1364_v46 = vadd.f32 %v1363_v3, %v1362_v6  ;;  %v1376_v40 = vsel %vm94_vm0, %v1342_v29, 0.0  ;;  %v1383_v59 = vsel %vm94_vm0, %v1343_v2, 0.0 }
 0x665   :  { %v1324_v10 = vmul.f32 %v2209_v36, %v2785_v50  ;;  %v1358_v47 = vrot.slane %v1357_v24, 2  ;;  %v1371_v49 = vadd.f32 %v1370_v45, %v1369_v33  ;;  %v1377_v27 = vrot.slane %v1376_v40, 4 }
 0x666   :  { %v1365_v43 = vrot.slane %v1364_v46, 2  ;;  %v1384_v54 = vrot.slane %v1383_v59, 4  ;;  %v2837_v21 = vsel %vm94_vm0, %v1344_v5, 0.0  ;;  %v1089_v15 = vmax.f32 %v1087_v35, %v1088_v61 }
 0x667   :  { %v1359_v13 = vadd.f32 %v1358_v47, %v1357_v24  ;;  %v1372_v7 = vrot.slane %v1371_v49, 2  ;;  %v1378_v25 = vadd.f32 %v1377_v27, %v1376_v40  ;;  %v1113_v51 = vsel %vm94_vm0, %v2807_v1, -inf }
 0x668   :  { %v2841_v19 = vmul.f32 %v1334_v48, %v1323_v32  ;;  %v2843_v11 = vadd.f32 %v1365_v43, %v1364_v46  ;;  %v1090_v50 = vrot.slane %v1089_v15, 1  ;;  %v1096_v53 = vmax.f32 %v1094_v23, %v1095_v39 }
 0x669   :  { %v2845_v28 = vmul.f32 %v1334_v48, %v1324_v10  ;;  %v1360_v12 = vrot.slane %v1359_v13, 1  ;;  %v1391_v42 = vrot.slane %v2837_v21, 4  ;;  %v1102_v14 = vrot.slane %v1101_v22, 2 }
 0x66a   :  { %v2848_v31 = vadd.f32 %v1372_v7, %v1371_v49  ;;  %v2850_v35 = vadd.f32 %v1384_v54, %v1383_v59  ;;  %v1097_v58 = vrot.slane %v1096_v53, 1  ;;  %v1108_v37 = vmax.f32 %v1106_v30, %v1107_v4  ;;  %v1998_v7 = vld [vmem:[#allocation2 + $0x1a0] sm:$0xf] }
 0x66b   :  { %v1367_v52 = vrot.slane %v2843_v11, 1  ;;  %v1379_v56 = vrot.slane %v1378_v25, 2  ;;  %v1091_v26 = vmax.f32 %v1089_v15, %v1090_v50  ;;  %v1103_v18 = vmax.f32 %v1101_v22, %v1102_v14  ;;  %v2075_v14 = vld [vmem:[#allocation2 + $0x18c] sm:$0xf0] }
 0x66c   :  { %v2853_v16 = vadd.f32 %v1360_v12, %v1359_v13  ;;  %v1098_v23 = vmax.f32 %v1096_v53, %v1097_v58  ;;  %v1109_v48 = vrot.slane %v1108_v37, 2  ;;  %v1114_v57 = vrot.slane %v1113_v51, 4  ;;  %v1994_v12 = vld [vmem:[#allocation2 + $0x180] sm:$0xf] }
 0x66d   :  { %v1104_v61 = vrot.slane %v1103_v18, 1  ;;  %v1120_v0 = vsel %vm94_vm0, %v2817_v41, -inf  ;;  %v1127_v62 = vsel %vm94_vm0, %v2819_v9, -inf  ;;  %v1134_v30 = vsel %vm94_vm0, %v2822_v20, -inf }
 0x66e   :  { %v1110_v29 = vmax.f32 %v1108_v37, %v1109_v48  ;;  %v1115_v38 = vmax.f32 %v1113_v51, %v1114_v57  ;;  %v1121_v6 = vrot.slane %v1120_v0, 4  ;;  %v1128_v36 = vrot.slane %v1127_v62, 4  ;;  %v2076_v51 = vld [vmem:[#allocation2 + $0x1ac] sm:$0xf0] }
 0x66f   :  { %v1105_v22 = vmax.f32 %v1103_v18, %v1104_v61  ;;  %v1135_v2 = vrot.slane %v1134_v30, 4  ;;  %v1149_v3 = vsub.f32 %v2791_v8, %v1091_v26  ;;  %v1150_v33 = vsub.f32 %v2793_v55, %v1098_v23 }
 0x670   :  { %v1111_v4 = vrot.slane %v1110_v29, 1  ;;  %v1116_v5 = vrot.slane %v1115_v38, 2  ;;  %v1122_v24 = vmax.f32 %v1120_v0, %v1121_v6  ;;  %v1129_v45 = vmax.f32 %v1127_v62, %v1128_v36 }
 0x671   :  { %v1136_v39 = vmax.f32 %v1134_v30, %v1135_v2  ;;  %v1151_v32 = vsub.f32 %v2798_v34, %v1105_v22  ;;  %v1173_v46 = vmul.f32 1.442695, %v1149_v3  ;;  %v1175_v40 = vmul.f32 1.442695, %v1150_v33 }
 0x672   :  { %v1112_v59 = vmax.f32 %v1110_v29, %v1111_v4  ;;  %v1117_v10 = vmax.f32 %v1115_v38, %v1116_v5  ;;  %v1123_v47 = vrot.slane %v1122_v24, 2  ;;  %v1130_v49 = vrot.slane %v1129_v45, 2 }
 0x673   :  { %v2864_v27 = vadd.f32 %v1379_v56, %v1378_v25  ;;  %v1137_v43 = vrot.slane %v1136_v39, 2  ;;  %2210 = vpow2.f32 %v1173_v46  ;;  %v1177_v8 = vmul.f32 1.442695, %v1151_v32 }
 0x674   :  { %v1118_v54 = vrot.slane %v1117_v10, 1  ;;  %v1124_v55 = vmax.f32 %v1122_v24, %v1123_v47  ;;  %v1131_v15 = vmax.f32 %v1129_v45, %v1130_v49  ;;  %v1152_v13 = vsub.f32 %v2805_v60, %v1112_v59 }
 0x675   :  { %v1374_v34 = vrot.slane %v2848_v31, 1  ;;  %v1138_v50 = vmax.f32 %v1136_v39, %v1137_v43  ;;  %2212 = vpow2.f32 %v1175_v40  ;;  %v1999_v53 = vor.u32 %v2076_v51, %v1998_v7 }
 0x676   :  { %v1119_v58 = vmax.f32 %v1117_v10, %v1118_v54  ;;  %v1125_v25 = vrot.slane %v1124_v55, 1  ;;  %v1132_v37 = vrot.slane %v1131_v15, 1  ;;  %2214 = vpow2.f32 %v1177_v8 }
 0x677   :  { %v2869_v56 = vadd.f32 %v1367_v52, %v2843_v11  ;;  %v1139_v26 = vrot.slane %v1138_v50, 1  ;;  %v1179_v18 = vmul.f32 1.442695, %v1152_v13  ;;  %1551 = vmatpush.bf16.msrb.mxu1 %v1999_v53  ;;  %v1995_v60 = vor.u32 %v2075_v14, %v1994_v12 }
 0x678   :  { %v1126_v23 = vmax.f32 %v1124_v55, %v1125_v25  ;;  %v1133_v48 = vmax.f32 %v1131_v15, %v1132_v37  ;;  %v1153_v57 = vsub.f32 %v2807_v1, %v1119_v58  ;;  %v1381_v61 = vrot.slane %v2864_v27, 1 }
 0x679   :  { %v2873_v0 = vpop.eup %2210  ;;  %v1140_v62 = vmax.f32 %v1138_v50, %v1139_v26  ;;  %2216 = vpow2.f32 %v1179_v18  ;;  %v1386_v30 = vrot.slane %v2850_v35, 2  ;;  %v1392_v11 = vadd.f32 %v1391_v42, %v2837_v21 }
 0x67a   :  { %v1154_v52 = vsub.f32 %v2817_v41, %v1126_v23  ;;  %v1155_v29 = vsub.f32 %v2819_v9, %v1133_v48  ;;  %v1181_v38 = vmul.f32 1.442695, %v1153_v57  ;;  %v1245_v1 = vsel %vm94_vm0, %v2873_v0, 0.0 }
 0x67b   :  { %v2883_v6 = vpop.eup %2212  ;;  %v1156_v36 = vsub.f32 %v2822_v20, %v1140_v62  ;;  %v1246_v22 = vrot.slane %v1245_v1, 4  ;;  %1552 = vmatpush.bf16.msrb.mxu1 %v1995_v60  ;;  %v1393_v2 = vrot.slane %v1392_v11, 2  ;;  %v1397_v3 = vsel %vm94_vm0, %v2841_v19, 0.0 }
 0x67c   :  { %v2888_v33 = vpop.eup %2214  ;;  %2218 = vpow2.f32 %v1181_v38  ;;  %v1183_v41 = vmul.f32 1.442695, %v1154_v52  ;;  %v1185_v21 = vmul.f32 1.442695, %v1155_v29  ;;  %v1252_v9 = vsel %vm94_vm0, %v2883_v6, 0.0 }
 0x67d   :  { %v1187_v42 = vmul.f32 1.442695, %v1156_v36  ;;  %v1247_v4 = vadd.f32 %v1246_v22, %v1245_v1  ;;  %v1253_v5 = vrot.slane %v1252_v9, 4  ;;  %v1259_v20 = vsel %vm94_vm0, %v2888_v33, 0.0 }
 0x67e   :  { %2220 = vpow2.f32 %v1183_v41  ;;  %v1260_v24 = vrot.slane %v1259_v20, 4  ;;  %v2895_v45 = vadd.f32 %v1386_v30, %v2850_v35  ;;  %v2897_v19 = vadd.f32 %v1393_v2, %v1392_v11 }
 0x67f   :  { %v2899_v39 = vpop.eup %2216  ;;  %2222 = vpow2.f32 %v1185_v21  ;;  %v1248_v32 = vrot.slane %v1247_v4, 2  ;;  %v1254_v46 = vadd.f32 %v1253_v5, %v1252_v9  ;;  %v1398_v40 = vrot.slane %v1397_v3, 4 }
 0x680   :  { %2224 = vpow2.f32 %v1187_v42  ;;  %v1261_v59 = vadd.f32 %v1260_v24, %v1259_v20  ;;  %v1266_v10 = vsel %vm94_vm0, %v2899_v39, 0.0  ;;  %v2904_v47 = vadd.f32 %v1374_v34, %v2848_v31 }
 0x681   :  { %v1249_v49 = vadd.f32 %v1248_v32, %v1247_v4  ;;  %v1255_v43 = vrot.slane %v1254_v46, 2  ;;  %v1267_v35 = vrot.slane %v1266_v10, 4  ;;  %v2907_v8 = vadd.f32 %v1381_v61, %v2864_v27 }
 0x682   :  { %v2909_v54 = vpop.eup %2218  ;;  %v1262_v55 = vrot.slane %v1261_v59, 2  ;;  %v1388_v15 = vrot.slane %v2895_v45, 1  ;;  %v1395_v13 = vrot.slane %v2897_v19, 1  ;;  %v1399_v7 = vadd.f32 %v1398_v40, %v1397_v3 }
 0x683   :  { %v1250_v51 = vrot.slane %v1249_v49, 1  ;;  %v1256_v50 = vadd.f32 %v1255_v43, %v1254_v46  ;;  %v1268_v53 = vadd.f32 %v1267_v35, %v1266_v10  ;;  %v1273_v31 = vsel %vm94_vm0, %v2909_v54, 0.0 }
 0x684   :  { %v2915_v34 = vpop.eup %2220  ;;  %v1263_v12 = vadd.f32 %v1262_v55, %v1261_v59  ;;  %v1274_v14 = vrot.slane %v1273_v31, 4  ;;  %v1400_v27 = vrot.slane %v1399_v7, 2  ;;  %v1404_v58 = vsel %vm94_vm0, %v2845_v28, 0.0 }
 0x685   :  { %v2919_v25 = vpop.eup %2222  ;;  %v1251_v37 = vadd.f32 %v1250_v51, %v1249_v49  ;;  %v1257_v26 = vrot.slane %v1256_v50, 1  ;;  %v1269_v18 = vrot.slane %v1268_v53, 2  ;;  %v1280_v60 = vsel %vm94_vm0, %v2915_v34, 0.0 }
 0x686   :  { %v2923_v23 = vpop.eup %2224  ;;  %v1264_v48 = vrot.slane %v1263_v12, 1  ;;  %v1275_v57 = vadd.f32 %v1274_v14, %v1273_v31  ;;  %v1281_v61 = vrot.slane %v1280_v60, 4  ;;  %v1287_v62 = vsel %vm94_vm0, %v2919_v25, 0.0 }
 0x687   :  { %v1258_v30 = vadd.f32 %v1257_v26, %v1256_v50  ;;  %v1270_v11 = vadd.f32 %v1269_v18, %v1268_v53  ;;  %v1288_v52 = vrot.slane %v1287_v62, 4  ;;  %v1294_v28 = vsel %vm94_vm0, %v2923_v23, 0.0 }
 0x688   :  { %v1265_v29 = vadd.f32 %v1264_v48, %v1263_v12  ;;  %v1276_v38 = vrot.slane %v1275_v57, 2  ;;  %v1282_v1 = vadd.f32 %v1281_v61, %v1280_v60  ;;  %v1295_v36 = vrot.slane %v1294_v28, 4 }
 0x689   :  { %v1271_v22 = vrot.slane %v1270_v11, 1  ;;  %v1289_v2 = vadd.f32 %v1288_v52, %v1287_v62  ;;  %2226 = vrcp.f32 %v1251_v37  ;;  %v1401_v3 = vadd.f32 %v1400_v27, %v1399_v7  ;;  %v1336_v27 = vpop.permute.xlu2 %1335 }
 0x68a   :  { %v1277_v41 = vadd.f32 %v1276_v38, %v1275_v57  ;;  %v1283_v21 = vrot.slane %v1282_v1, 2  ;;  %v1296_v9 = vadd.f32 %v1295_v36, %v1294_v28  ;;  %2228 = vrcp.f32 %v1258_v30 }
 0x68b   :  { %v1272_v42 = vadd.f32 %v1271_v22, %v1270_v11  ;;  %v1290_v4 = vrot.slane %v1289_v2, 2  ;;  %2230 = vrcp.f32 %v1265_v29  ;;  %v1402_v5 = vrot.slane %v1401_v3, 1 }
 0x68c   :  { %v1278_v20 = vrot.slane %v1277_v41, 1  ;;  %v1284_v24 = vadd.f32 %v1283_v21, %v1282_v1  ;;  %v1297_v32 = vrot.slane %v1296_v9, 2  ;;  %v1405_v46 = vrot.slane %v1404_v58, 4 }
 0x68d   :  { %v1291_v40 = vadd.f32 %v1290_v4, %v1289_v2  ;;  %2232 = vrcp.f32 %v1272_v42  ;;  %v2930_v59 = vadd.f32 %v1388_v15, %v2895_v45  ;;  %v1467_v10 = vpack.c.bf16 %v2853_v16, %v2853_v16 }
 0x68e   :  { %v1279_v49 = vadd.f32 %v1278_v20, %v1277_v41  ;;  %v1285_v43 = vrot.slane %v1284_v24, 1  ;;  %v1298_v35 = vadd.f32 %v1297_v32, %v1296_v9  ;;  %v1406_v55 = vadd.f32 %v1405_v46, %v1404_v58 }
 0x68f   :  { %v2227_v7 = vpop.eup %2226  ;;  %v1292_v51 = vrot.slane %v1291_v40, 1  ;;  %v2935_v50 = vadd.f32 %v1395_v13, %v2897_v19  ;;  %v2937_v53 = vadd.f32 %v1402_v5, %v1401_v3  ;;  %v1468_v31 = vpack.c.bf16 %v2869_v56, %v2869_v56 }
 0x690   :  { %v2229_v12 = vpop.eup %2228  ;;  %v1286_v45 = vadd.f32 %v1285_v43, %v1284_v24  ;;  %2234 = vrcp.f32 %v1279_v49  ;;  %v1325_v15 = vmul.f32 %v2227_v7, %v2873_v0  ;;  %v1299_v16 = vrot.slane %v1298_v35, 1 }
 0x691   :  { %v2231_v14 = vpop.eup %2230  ;;  %v1326_v58 = vmul.f32 %v2229_v12, %v2883_v6  ;;  %v1293_v37 = vadd.f32 %v1292_v51, %v1291_v40  ;;  %v1407_v26 = vrot.slane %v1406_v55, 2  ;;  %v1469_v19 = vpack.c.bf16 %v2904_v47, %v2904_v47 }
 0x692   :  { %v1327_v13 = vmul.f32 %v2231_v14, %v2888_v33  ;;  %v1347_v18 = vmul.f32 %v1336_v27, %v1325_v15  ;;  %v1300_v60 = vadd.f32 %v1299_v16, %v1298_v35  ;;  %2236 = vrcp.f32 %v1286_v45 }
 0x693   :  { %v2233_v56 = vpop.eup %2232  ;;  %v1348_v48 = vmul.f32 %v1336_v27, %v1326_v58  ;;  %2238 = vrcp.f32 %v1293_v37  ;;  %v1408_v57 = vadd.f32 %v1407_v26, %v1406_v55  ;;  %v1470_v0 = vpack.c.bf16 %v2907_v8, %v2907_v8 }
 0x694   :  { %v1328_v61 = vmul.f32 %v2233_v56, %v2899_v39  ;;  %v1349_v6 = vmul.f32 %v1336_v27, %v1327_v13  ;;  %2240 = vrcp.f32 %v1300_v60  ;;  %v1411_v62 = vsel %vm94_vm0, %v1347_v18, 0.0 }
 0x695   :  { %v1412_v30 = vrot.slane %v1411_v62, 4  ;;  %v1418_v11 = vsel %vm94_vm0, %v1348_v48, 0.0  ;;  %v1471_v33 = vpack.c.bf16 %v2930_v59, %v2930_v59  ;;  %v1472_v52 = vpack.c.bf16 %v2935_v50, %v2935_v50 }
 0x696   :  { %v2235_v28 = vpop.eup %2234  ;;  %v1350_v29 = vmul.f32 %v1336_v27, %v1328_v61  ;;  %v1409_v38 = vrot.slane %v1408_v57, 1  ;;  %v1419_v1 = vrot.slane %v1418_v11, 4  ;;  %v1425_v36 = vsel %vm94_vm0, %v1349_v6, 0.0 }
 0x697   :  { %v1329_v39 = vmul.f32 %v2235_v28, %v2909_v54  ;;  %v1413_v22 = vadd.f32 %v1412_v30, %v1411_v62  ;;  %v1426_v2 = vrot.slane %v1425_v36, 4  ;;  %v1473_v3 = vpack.c.bf16 %v2937_v53, %v2937_v53 }
 0x698   :  { %v2237_v41 = vpop.eup %2236  ;;  %v1420_v21 = vadd.f32 %v1419_v1, %v1418_v11  ;;  %v1432_v9 = vsel %vm94_vm0, %v1350_v29, 0.0  ;;  %v2960_v42 = vunpack.c.l.b16 %v1467_v10  ;;  %v2962_v4 = vunpack.c.l.b16 %v1468_v31 }
 0x699   :  { %v2239_v5 = vpop.eup %2238  ;;  %v1330_v20 = vmul.f32 %v2237_v41, %v2915_v34  ;;  %v1351_v24 = vmul.f32 %v1336_v27, %v1329_v39  ;;  %v1414_v32 = vrot.slane %v1413_v22, 2  ;;  %v1427_v46 = vadd.f32 %v1426_v2, %v1425_v36 }
 0x69a   :  { %v2241_v54 = vpop.eup %2240  ;;  %v1331_v40 = vmul.f32 %v2239_v5, %v2919_v25  ;;  %v2966_v49 = vadd.f32 %v1409_v38, %v1408_v57  ;;  %v1421_v43 = vrot.slane %v1420_v21, 2  ;;  %v1433_v35 = vrot.slane %v1432_v9, 4 }
 0x69b   :  { %v1332_v55 = vmul.f32 %v2241_v54, %v2923_v23  ;;  %v1352_v7 = vmul.f32 %v1336_v27, %v1330_v20  ;;  %v1415_v10 = vadd.f32 %v1414_v32, %v1413_v22  ;;  %v1428_v51 = vrot.slane %v1427_v46, 2 }
 0x69c   :  { %v1353_v31 = vmul.f32 %v1336_v27, %v1331_v40  ;;  %v1422_v12 = vadd.f32 %v1421_v43, %v1420_v21  ;;  %v1434_v45 = vadd.f32 %v1433_v35, %v1432_v9  ;;  %v1439_v34 = vsel %vm94_vm0, %v1351_v24, 0.0 }
 0x69d   :  { %v1354_v15 = vmul.f32 %v1336_v27, %v1332_v55  ;;  %v1416_v16 = vrot.slane %v1415_v10, 1  ;;  %v1429_v14 = vadd.f32 %v1428_v51, %v1427_v46  ;;  %v1440_v58 = vrot.slane %v1439_v34, 4 }
 0x69e   :  { %v1423_v37 = vrot.slane %v1422_v12, 1  ;;  %v1435_v25 = vrot.slane %v1434_v45, 2  ;;  %v1446_v26 = vsel %vm94_vm0, %v1352_v7, 0.0  ;;  %v1453_v13 = vsel %vm94_vm0, %v1353_v31, 0.0 }
 0x69f   :  { %v1417_v18 = vadd.f32 %v1416_v16, %v1415_v10  ;;  %v1430_v23 = vrot.slane %v1429_v14, 1  ;;  %v1441_v60 = vadd.f32 %v1440_v58, %v1439_v34  ;;  %v1447_v56 = vrot.slane %v1446_v26, 4 }
 0x6a0   :  { %v1424_v48 = vadd.f32 %v1423_v37, %v1422_v12  ;;  %v1436_v57 = vadd.f32 %v1435_v25, %v1434_v45  ;;  %v1454_v61 = vrot.slane %v1453_v13, 4  ;;  %v1460_v6 = vsel %vm94_vm0, %v1354_v15, 0.0 }
 0x6a1   :  { %v1431_v62 = vadd.f32 %v1430_v23, %v1429_v14  ;;  %v1442_v27 = vrot.slane %v1441_v60, 2  ;;  %v1448_v30 = vadd.f32 %v1447_v56, %v1446_v26  ;;  %v1461_v11 = vrot.slane %v1460_v6, 4 }
 0x6a2   :  { %v1437_v28 = vrot.slane %v1436_v57, 1  ;;  %v1455_v29 = vadd.f32 %v1454_v61, %v1453_v13  ;;  %v1475_v38 = vpack.c.bf16 %v1417_v18, %v1417_v18  ;;  %v1501_v1 = vunpack.c.l.b16 %v1469_v19 }
 0x6a3   :  { %v1443_v36 = vadd.f32 %v1442_v27, %v1441_v60  ;;  %v1449_v39 = vrot.slane %v1448_v30, 2  ;;  %v1462_v22 = vadd.f32 %v1461_v11, %v1460_v6  ;;  %v1476_v2 = vpack.c.bf16 %v1424_v48, %v1424_v48 }
 0x6a4   :  { %v1438_v41 = vadd.f32 %v1437_v28, %v1436_v57  ;;  %v1456_v21 = vrot.slane %v1455_v29, 2  ;;  %v1477_v9 = vpack.c.bf16 %v1431_v62, %v1431_v62  ;;  %v1502_v5 = vunpack.c.l.b16 %v1470_v0  ;;  %v922_v62 = vld [vmem:[#allocation5 + $0x41] ss:$0 sm:$0xff] }
 0x6a5   :  { %v1444_v20 = vrot.slane %v1443_v36, 1  ;;  %v1450_v24 = vadd.f32 %v1449_v39, %v1448_v30  ;;  %v1463_v32 = vrot.slane %v1462_v22, 2  ;;  %v1474_v46 = vpack.c.bf16 %v2966_v49, %v2966_v49 }
 0x6a6   :  { %v1457_v54 = vadd.f32 %v1456_v21, %v1455_v29  ;;  %v1478_v47 = vpack.c.bf16 %v1438_v41, %v1438_v41  ;;  %v1503_v19 = vunpack.c.l.b16 %v1471_v33  ;;  %v1507_v40 = vunpack.c.l.b16 %v1475_v38 }
 0x6a7   :  { %v1445_v43 = vadd.f32 %v1444_v20, %v1443_v36  ;;  %v1451_v35 = vrot.slane %v1450_v24, 1  ;;  %v1464_v55 = vadd.f32 %v1463_v32, %v1462_v22  ;;  %v1508_v7 = vunpack.c.l.b16 %v1476_v2  ;;  %v2078_v32 = vld [vmem:[#allocation2 + $0x1ec] sm:$0xf0] }
 0x6a8   :  { %v1458_v10 = vrot.slane %v1457_v54, 1  ;;  %v1504_v8 = vunpack.c.l.b16 %v1472_v52  ;;  %v1509_v0 = vunpack.c.l.b16 %v1477_v9  ;;  %v1515_v49 = vsel %vm668_vm1, %v2962_v4, %v2960_v42 }
 0x6a9   :  { %v1452_v51 = vadd.f32 %v1451_v35, %v1450_v24  ;;  %v1465_v31 = vrot.slane %v1464_v55, 1  ;;  %v1479_v12 = vpack.c.bf16 %v1445_v43, %v1445_v43  ;;  %v1516_v59 = vsel %vm670_vm2, %v1501_v1, %v1515_v49 }
 0x6aa   :  { %v1459_v33 = vadd.f32 %v1458_v10, %v1457_v54  ;;  %v1505_v45 = vunpack.c.l.b16 %v1473_v3  ;;  %v1517_v34 = vsel %vm672_vm3, %v1502_v5, %v1516_v59  ;;  %v1522_v50 = vsel %vm668_vm1, %v1508_v7, %v1507_v40  ;;  %v2082_v7 = vld [vmem:[#allocation2 + $0x26c] sm:$0xf0] }
 0x6ab   :  { %v1466_v52 = vadd.f32 %v1465_v31, %v1464_v55  ;;  %v1480_v15 = vpack.c.bf16 %v1452_v51, %v1452_v51  ;;  %v1510_v16 = vunpack.c.l.b16 %v1478_v47  ;;  %v1518_v14 = vsel %vm674_vm4, %v1503_v19, %v1517_v34  ;;  %v2077_v19 = vld [vmem:[#allocation2 + $0x1cc] sm:$0xf0]  ;;  %v2024_v55 = vld [vmem:[#allocation2 + $0x260] sm:$0xf] }
 0x6ac   :  { %v1481_v42 = vpack.c.bf16 %v1459_v33, %v1459_v33  ;;  %v1511_v4 = vunpack.c.l.b16 %v1479_v12  ;;  %v1519_v58 = vsel %vm676_vm5, %v1504_v8, %v1518_v14  ;;  %v1523_v37 = vsel %vm670_vm2, %v1509_v0, %v1522_v50 }
 0x6ad   :  { %v1482_v25 = vpack.c.bf16 %v1466_v52, %v1466_v52  ;;  %v1512_v26 = vunpack.c.l.b16 %v1480_v15  ;;  %v1524_v53 = vsel %vm672_vm3, %v1510_v16, %v1523_v37  ;;  %v1520_v13 = vsel %vm678_vm6, %v1505_v45, %v1519_v58  ;;  %v925_v58 = vld [vmem:[#allocation5 + $0x44] ss:$0 sm:$0xff] }
 0x6ae   :  { %v1513_v3 = vunpack.c.l.b16 %v1481_v42  ;;  %v1525_v18 = vsel %vm674_vm4, %v1511_v4, %v1524_v53  ;;  %v1506_v23 = vunpack.c.l.b16 %v1474_v46  ;;  %v2003_v46 = vld [vmem:[#allocation2 + $0x1c0] sm:$0xf]  ;;  %v2025_v8 = vor.u32 %v2082_v7, %v2024_v55  ;;  %v926_v53 = vld [vmem:[#allocation5 + $0x45] ss:$0 sm:$0xff] }
 0x6af   :  { %v1514_v60 = vunpack.c.l.b16 %v1482_v25  ;;  %v1526_v56 = vsel %vm676_vm5, %v1512_v26, %v1525_v18  ;;  %v2004_v43 = vor.u32 %v2077_v19, %v2003_v46 }
 0x6b0   :  { %v1527_v48 = vsel %vm678_vm6, %v1513_v3, %v1526_v56  ;;  %v1521_v57 = vsel %vm680_vm7, %v1506_v23, %v1520_v13  ;;  %1673 = vmatpush.bf16.msrb.mxu3 %v2025_v8  ;;  %v2081_v56 = vld [vmem:[#allocation2 + $0x24c] sm:$0xf0] }
 0x6b1   :  { %v1528_v61 = vsel %vm680_vm7, %v1514_v60, %v1527_v48  ;;  %v2020_v60 = vld [vmem:[#allocation2 + $0x240] sm:$0xf] }
 0x6b2   :  { %v1529_v6 = vpack.c.b16 %v1528_v61, %v1521_v57  ;;  %v2016_v48 = vld [vmem:[#allocation2 + $0x220] sm:$0xf]  ;;  %v2021_v57 = vor.u32 %v2081_v56, %v2020_v60  ;;  %v2080_v61 = vld [vmem:[#allocation2 + $0x22c] sm:$0xf0] }
 0x6b4   :  { %2000 = vmatmul.msk.bf16.vlgmr.msrb.gmra.mxu1 %vm94_vm0, %v1529_v6  ;;  %1674 = vmatpush.bf16.msrb.mxu3 %v2021_v57  ;;  %v2017_v6 = vor.u32 %v2080_v61, %v2016_v48 }
 0x6b8   :  { %1675 = vmatpush.bf16.msrb.mxu3 %v2017_v6 }
 0x731   :  { %v1554_v27 = vpop.f32.mrf.mxu1 }
 0x732   :  { %v1555_v30 = vadd.f32 %v1554_v27, %v922_v62  ;;  %v2079_v27 = vld [vmem:[#allocation2 + $0x20c] sm:$0xf0] }
 0x734   :  { %v1559_v11 = vadd.f32 %v1555_v30, %v2692_v63 }
 0x736   :  { %v1561_v28 = vsel %vm94_vm0, %v1559_v11, 0.0 }
 0x737   :  { %1562 = vadd.xlane.f32.xlu0 %v1561_v28  ;;  %v923_v28 = vld [vmem:[#allocation5 + $0x42] ss:$0 sm:$0xff] }
 0x739   :  { %v1556_v29 = vpop.f32.mrf.mxu1 }
 0x73a   :  { %v1557_v38 = vadd.f32 %v1556_v29, %v922_v62  ;;  %v2012_v62 = vld [vmem:[#allocation2 + $0x200] sm:$0xf] }
 0x73b   :  { %v2013_v30 = vor.u32 %v2079_v27, %v2012_v62 }
 0x73c   :  { %v1560_v1 = vadd.f32 %v1557_v38, %v2694_v44  ;;  %v2007_v44 = vld [vmem:[#allocation2 + $0x1e0] sm:$0xf] }
 0x73d   :  { %v2008_v47 = vor.u32 %v2078_v32, %v2007_v44  ;;  %1676 = vmatpush.bf16.msrb.mxu3 %v2013_v30 }
 0x73e   :  { %v1564_v36 = vsel %vm94_vm0, %v1560_v1, 0.0 }
 0x73f   :  { %1565 = vadd.xlane.f32.xlu2 %v1564_v36  ;;  %1631 = vmatpush.bf16.msrb.mxu2 %v2008_v47 }
 0x743   :  { %1632 = vmatpush.bf16.msrb.mxu2 %v2004_v43 }
 0x7aa   :  { %v1563_v39 = vpop.xlane.xlu0 %1562 }
 0x7ab   :  { %v1567_v22 = vmul.f32 %v1563_v39, %v2674_v17 }
 0x7ad   :  { %v1569_v2 = vsub.f32 %v1559_v11, %v1567_v22 }
 0x7af   :  { %v1571_v41 = vmul.f32 %v1569_v2, %v1569_v2 }
 0x7b1   :  { %v1573_v21 = vsel %vm94_vm0, %v1571_v41, 0.0 }
 0x7b2   :  { %v1566_v9 = vpop.xlane.xlu2 %1565  ;;  %1574 = vadd.xlane.f32.xlu1 %v1573_v21 }
 0x7b3   :  { %v1568_v63 = vmul.f32 %v1566_v9, %v2674_v17 }
 0x7b5   :  { %v1570_v5 = vsub.f32 %v1560_v1, %v1568_v63 }
 0x7b7   :  { %v1572_v20 = vmul.f32 %v1570_v5, %v1570_v5 }
 0x7b9   :  { %v1576_v24 = vsel %vm94_vm0, %v1572_v20, 0.0 }
 0x7ba   :  { %1577 = vadd.xlane.f32.xlu0 %v1576_v24 }
 0x825   :  { %v1575_v54 = vpop.xlane.xlu1 %1574 }
 0x826   :  { %v1579_v40 = vmul.f32 %v1575_v54, %v2674_v17 }
 0x828   :  { %v1581_v35 = vadd.f32 1e-05, %v1579_v40 }
 0x82a   :  { %2242 = vrsqrt.f32 %v1581_v35  ;;  %vm1589_vm3 = vweird.f32 %v1581_v35 }
 0x82d   :  { %v1578_v10 = vpop.xlane.xlu0 %1577 }
 0x82e   :  { %v1580_v0 = vmul.f32 %v1578_v10, %v2674_v17 }
 0x830   :  { %v2243_v49 = vpop.eup %2242  ;;  %v1582_v51 = vadd.f32 1e-05, %v1580_v0 }
 0x831   :  { %v1584_v31 = vmul.f32 %v2243_v49, %v1581_v35  ;;  %vm1590_vm2 = vweird.f32 %v2243_v49 }
 0x832   :  { %2244 = vrsqrt.f32 %v1582_v51  ;;  %vm1591_vm4 = vmor %vm1589_vm3, %vm1590_vm2  ;;  %vm1599_vm6 = vweird.f32 %v1582_v51 }
 0x833   :  { %v1585_v12 = vmul.f32 %v2243_v49, %v1584_v31 }
 0x835   :  { %v1586_v59 = vmul.f32 0.5, %v1585_v12  ;;  %v2088_v12 = vld [vmem:[#allocation2 + $0x2ac] sm:$0xf] }
 0x837   :  { %v1587_v33 = vsub.f32 1.5, %v1586_v59  ;;  %v2055_v59 = vld [vmem:[#allocation2 + $0x2b8] sm:$0xf0] }
 0x838   :  { %v2245_v45 = vpop.eup %2244 }
 0x839   :  { %v1588_v34 = vmul.f32 %v2243_v49, %v1587_v33  ;;  %v1594_v50 = vmul.f32 %v2245_v45, %v1582_v51  ;;  %vm1600_vm5 = vweird.f32 %v2245_v45  ;;  %v2090_v51 = vld [vmem:[#allocation2 + $0x2b4] sm:$0xf0]  ;;  %v2045_v33 = vld [vmem:[#allocation2 + $0x2a0] sm:$0xf] }
 0x83a   :  { %vm1601_vm7 = vmor %vm1599_vm6, %vm1600_vm5 }
 0x83b   :  { %v1595_v52 = vmul.f32 %v2245_v45, %v1594_v50  ;;  %v1592_v15 = vsel %vm1591_vm4, %v2243_v49, %v1588_v34  ;;  %v2053_v49 = vld [vmem:[#allocation2 + $0x2a8] sm:$0xf]  ;;  %v2089_v34 = vld [vmem:[#allocation2 + $0x2ac] sm:$0xf0]  ;;  %v2087_v50 = vld [vmem:[#allocation2 + $0x2a4] sm:$0xf] }
 0x83c   :  { %v1603_v42 = vmul.f32 %v1592_v15, %v1569_v2  ;;  %v924_v2 = vld [vmem:[#allocation5 + $0x43] ss:$0 sm:$0xff]  ;;  %v2054_v31 = vor.u32 %v2090_v51, %v2053_v49  ;;  %v2046_v15 = vor.u32 %v2089_v34, %v2045_v33 }
 0x83d   :  { %v1596_v16 = vmul.f32 0.5, %v1595_v52  ;;  %v2047_v52 = vld [vmem:[#allocation2 + $0x2b0] sm:$0xf0] }
 0x83e   :  { %v1605_v26 = vmul.f32 %v1603_v42, %v925_v58  ;;  %1833 = vmatpush.bf16.msra.mxu2 %v2054_v31  ;;  %v2086_v42 = vld [vmem:[#allocation2 + $0x294] sm:$0xf0]  ;;  %1805 = vmatpush.bf16.msra.mxu0 %v2046_v15 }
 0x83f   :  { %v1597_v14 = vsub.f32 1.5, %v1596_v16  ;;  %v2050_v16 = vor.u32 %v2087_v50, %v2047_v52 }
 0x840   :  { %v1607_v13 = vadd.f32 %v1605_v26, %v926_v53  ;;  %v2085_v26 = vld [vmem:[#allocation2 + $0x28c] sm:$0xf0] }
 0x841   :  { %v1598_v4 = vmul.f32 %v2245_v45, %v1597_v14  ;;  %v2037_v14 = vld [vmem:[#allocation2 + $0x288] sm:$0xf]  ;;  %1819 = vmatpush.bf16.msra.mxu1 %v2050_v16 }
 0x843   :  { %v1602_v37 = vsel %vm1601_vm7, %v2245_v45, %v1598_v4  ;;  %v2058_v45 = vor.u32 %v2088_v12, %v2055_v59  ;;  %v2084_v4 = vld [vmem:[#allocation2 + $0x28c] sm:$0xf] }
 0x844   :  { %v1604_v25 = vmul.f32 %v1602_v37, %v1570_v5  ;;  %v2039_v37 = vld [vmem:[#allocation2 + $0x298] sm:$0xf0] }
 0x845   :  { %1847 = vmatpush.bf16.msra.mxu3 %v2058_v45 }
 0x846   :  { %v1606_v3 = vmul.f32 %v1604_v25, %v925_v58  ;;  %v2038_v58 = vor.u32 %v2086_v42, %v2037_v14  ;;  %v2029_v25 = vld [vmem:[#allocation2 + $0x280] sm:$0xf] }
 0x848   :  { %v1608_v18 = vadd.f32 %v1606_v3, %v926_v53  ;;  %v2042_v3 = vor.u32 %v2084_v4, %v2039_v37  ;;  %1834 = vmatpush.bf16.msra.mxu2 %v2038_v58 }
 0x84a   :  { %v1609_v23 = vpack.c.bf16 %v1608_v18, %v1607_v13  ;;  %1848 = vmatpush.bf16.msra.mxu3 %v2042_v3 }
 0x84c   :  { %2009 = vmatmul.msk.bf16.vlgmr.msrb.gmra.mxu2 %vm94_vm0, %v1609_v23  ;;  %v2031_v23 = vld [vmem:[#allocation2 + $0x290] sm:$0xf0] }
 0x8cf   :  { %v1634_v11 = vpop.f32.mrf.mxu2 }
 0x8d0   :  { %v1635_v29 = vadd.f32 %v1634_v11, %v923_v28 }
 0x8d2   :  { %v1639_v36 = vmax.f32 %v1635_v29, 0.0 }
 0x8d7   :  { %v1636_v38 = vpop.f32.mrf.mxu2 }
 0x8d8   :  { %v1637_v1 = vadd.f32 %v1636_v38, %v923_v28 }
 0x8da   :  { %v1640_v39 = vmax.f32 %v1637_v1, 0.0 }
 0x8dc   :  { %v1641_v22 = vpack.c.bf16 %v1640_v39, %v1639_v36  ;;  %v927_v39 = vld [vmem:[#allocation5 + $0x46] ss:$0 sm:$0xff] }
 0x8de   :  { %2026 = vmatmul.msk.bf16.vlgmr.msrb.gmra.mxu3 %vm833_vm15, %v1641_v22 }
 0x961   :  { %v1678_v41 = vpop.f32.mrf.mxu3 }
 0x962   :  { %v1679_v21 = vadd.f32 %v1678_v41, %v924_v2 }
 0x964   :  { %v1683_v9 = vadd.f32 %v1679_v21, %v1607_v13  ;;  %v2030_v13 = vor.u32 %v2085_v26, %v2029_v25 }
 0x966   :  { %v1685_v63 = vsel %vm94_vm0, %v1683_v9, 0.0  ;;  %1806 = vmatpush.bf16.msra.mxu0 %v2030_v13 }
 0x967   :  { %1686 = vadd.xlane.f32.xlu2 %v1685_v63 }
 0x969   :  { %v1680_v5 = vpop.f32.mrf.mxu3 }
 0x96a   :  { %v1681_v20 = vadd.f32 %v1680_v5, %v924_v2 }
 0x96c   :  { %v1684_v24 = vadd.f32 %v1681_v20, %v1608_v18  ;;  %v2083_v18 = vld [vmem:[#allocation2 + $0x284] sm:$0xf] }
 0x96d   :  { %v2034_v56 = vor.u32 %v2083_v18, %v2031_v23 }
 0x96e   :  { %v1688_v44 = vsel %vm94_vm0, %v1684_v24, 0.0 }
 0x96f   :  { %1689 = vadd.xlane.f32.xlu1 %v1688_v44  ;;  %1820 = vmatpush.bf16.msra.mxu1 %v2034_v56  ;;  %v1742_v44 = vld [vmem:[#allocation5 + $0x60] ss:$8 sm:$0xf] }
 0x970   :  { %v1750_v49 = vperm.slane %v1742_v44, 2  ;;  %v1751_v51 = vperm.slane %v1742_v44, 3 }
 0x9da   :  { %v1687_v32 = vpop.xlane.xlu2 %1686 }
 0x9db   :  { %v1691_v46 = vmul.f32 %v1687_v32, %v2674_v17  ;;  %v1745_v32 = vld [vmem:[#allocation5 + $0x62] ss:$0 sm:$0xff] }
 0x9dd   :  { %v3022_v54 = vsub.f32 %v1683_v9, %v1691_v46  ;;  %v928_v9 = vld [vmem:[#allocation5 + $0x47] ss:$0 sm:$0xff]  ;;  %v2345_v46 = vmov 0  }
 0x9de   :  { %2102 = vset.pattern.permute.xlu2 %v2345_v46  ;;  %2103 = vset.pattern.permute.xlu0 %v2345_v46 }
 0x9df   :  { %v1695_v47 = vmul.f32 %v3022_v54, %v3022_v54 }
 0x9e1   :  { %v1697_v19 = vsel %vm94_vm0, %v1695_v47, 0.0  ;;  %v1749_v47 = vperm.slane %v1742_v44, 1 }
 0x9e2   :  { %v1690_v40 = vpop.xlane.xlu1 %1689  ;;  %1698 = vadd.xlane.f32.xlu0 %v1697_v19  ;;  %v1744_v19 = vld [vmem:[#allocation5 + $0x61] ss:$8 sm:$0xf] }
 0x9e3   :  { %v1692_v43 = vmul.f32 %v1690_v40, %v2674_v17  ;;  %v1866_v12 = vperm.slane %v1744_v19, 2  ;;  %v1867_v58 = vperm.slane %v1744_v19, 3 }
 0x9e5   :  { %v3028_v35 = vsub.f32 %v1684_v24, %v1692_v43 }
 0x9e7   :  { %v1696_v55 = vmul.f32 %v3028_v35, %v3028_v35 }
 0x9e9   :  { %v1700_v7 = vsel %vm94_vm0, %v1696_v55, 0.0 }
 0x9ea   :  { %1701 = vadd.xlane.f32.xlu2 %v1700_v7  ;;  %v1864_v7 = vperm.slane %v1744_v19, 0 }
 0xa02   :  { %1892 = vperm.xlu2 %2102, %v1745_v32  }
 0xa55   :  { %v1699_v10 = vpop.xlane.xlu0 %1698 }
 0xa56   :  { %v1703_v8 = vmul.f32 %v1699_v10, %v2674_v17  ;;  %v1865_v10 = vperm.slane %v1744_v19, 1 }
 0xa58   :  { %v1705_v0 = vadd.f32 1e-05, %v1703_v8 }
 0xa5a   :  { %2246 = vrsqrt.f32 %v1705_v0  ;;  %vm1713_vm15 = vweird.f32 %v1705_v0 }
 0xa5d   :  { %v1702_v53 = vpop.xlane.xlu2 %1701 }
 0xa5e   :  { %v1704_v60 = vmul.f32 %v1702_v53, %v2674_v17 }
 0xa60   :  { %v2247_v48 = vpop.eup %2246  ;;  %v1706_v57 = vadd.f32 1e-05, %v1704_v60 }
 0xa61   :  { %v1708_v61 = vmul.f32 %v2247_v48, %v1705_v0  ;;  %vm1714_vm14 = vweird.f32 %v2247_v48 }
 0xa62   :  { %2248 = vrsqrt.f32 %v1706_v57  ;;  %vm1715_vm8 = vmor %vm1713_vm15, %vm1714_vm14  ;;  %vm1723_vm10 = vweird.f32 %v1706_v57 }
 0xa63   :  { %v1709_v6 = vmul.f32 %v2247_v48, %v1708_v61 }
 0xa65   :  { %v1710_v62 = vmul.f32 0.5, %v1709_v6 }
 0xa67   :  { %v1711_v27 = vsub.f32 1.5, %v1710_v62 }
 0xa68   :  { %v2249_v30 = vpop.eup %2248 }
 0xa69   :  { %v1712_v11 = vmul.f32 %v2247_v48, %v1711_v27  ;;  %v1718_v28 = vmul.f32 %v2249_v30, %v1706_v57  ;;  %vm1724_vm9 = vweird.f32 %v2249_v30 }
 0xa6a   :  { %vm1725_vm11 = vmor %vm1723_vm10, %vm1724_vm9 }
 0xa6b   :  { %v1719_v29 = vmul.f32 %v2249_v30, %v1718_v28  ;;  %v1716_v17 = vsel %vm1715_vm8, %v2247_v48, %v1712_v11 }
 0xa6c   :  { %v1727_v36 = vmul.f32 %v1716_v17, %v3022_v54  ;;  %v1748_v54 = vperm.slane %v1742_v44, 0  ;;  %v1893_v17 = vpop.permute.xlu2 %1892  ;;  %v1913_v44 = vlaneseq }
 0xa6d   :  { %v1720_v38 = vmul.f32 0.5, %v1719_v29 }
 0xa6e   :  { %v1729_v41 = vmul.f32 %v1727_v36, %v927_v39 }
 0xa6f   :  { %v1721_v1 = vsub.f32 1.5, %v1720_v38 }
 0xa70   :  { %v1731_v5 = vadd.f32 %v1729_v41, %v928_v9 }
 0xa71   :  { %v1722_v22 = vmul.f32 %v2249_v30, %v1721_v1 }
 0xa73   :  { %v1726_v2 = vsel %vm1725_vm11, %v2249_v30, %v1722_v22 }
 0xa74   :  { %v1728_v21 = vmul.f32 %v1726_v2, %v3028_v35 }
 0xa76   :  { %v1730_v63 = vmul.f32 %v1728_v21, %v927_v39 }
 0xa78   :  { %v1732_v20 = vadd.f32 %v1730_v63, %v928_v9 }
 0xa7a   :  { %v1746_v24 = vpack.c.bf16 %v1732_v20, %v1731_v5 }
 0xa7c   :  { %2059 = vmatmul.msk.bf16.vlgmr.msra.gmra.mxu0 %vm94_vm0, %v1746_v24  ;;  %2060 = vmatmul.msk.bf16.vlgmr.msra.gmra.mxu1 %vm94_vm0, %v1746_v24 }
 0xa7d   :  { %2061 = vmatmul.msk.bf16.vlgmr.msra.gmra.mxu2 %vm94_vm0, %v1746_v24  ;;  %2062 = vmatmul.msk.bf16.vlgmr.msra.gmra.mxu3 %vm94_vm0, %v1746_v24  ;;  %vm1919_vm0 = vcmask 58368  }
 0xaf9   :  { %v1808_v40 = vpop.f32.mrf.mxu0  ;;  %v1822_v43 = vpop.f32.mrf.mxu1 }
 0xafa   :  { %v1809_v35 = vadd.f32 %v1808_v40, %v1748_v54  ;;  %v1823_v55 = vadd.f32 %v1822_v43, %v1749_v47 }
 0xafc   :  { %v1855_v8 = vmax.f32 %v1809_v35, 0.0  ;;  %v1856_v0 = vmax.f32 %v1823_v55, 0.0 }
 0xafe   :  { %v1872_v33 = vmul.f32 %v1864_v7, %v1855_v8  ;;  %v1873_v45 = vmul.f32 %v1865_v10, %v1856_v0 }
 0xb00   :  { %v1836_v31 = vpop.f32.mrf.mxu2  ;;  %v1850_v59 = vpop.f32.mrf.mxu3  ;;  %v1880_v25 = vadd.f32 %v1873_v45, %v1872_v33 }
 0xb01   :  { %v1837_v34 = vadd.f32 %v1836_v31, %v1750_v49  ;;  %v1851_v50 = vadd.f32 %v1850_v59, %v1751_v51  ;;  %v1810_v52 = vpop.f32.mrf.mxu0  ;;  %v1824_v15 = vpop.f32.mrf.mxu1 }
 0xb02   :  { %v1811_v16 = vadd.f32 %v1810_v52, %v1748_v54  ;;  %v1825_v14 = vadd.f32 %v1824_v15, %v1749_v47  ;;  %v1914_v54 = vand.u32 127, %v1913_v44 }
 0xb03   :  { %v1857_v42 = vmax.f32 %v1837_v34, 0.0  ;;  %v1858_v4 = vmax.f32 %v1851_v50, 0.0 }
 0xb04   :  { %v1859_v37 = vmax.f32 %v1811_v16, 0.0  ;;  %v1860_v53 = vmax.f32 %v1825_v14, 0.0 }
 0xb05   :  { %v1874_v26 = vmul.f32 %v1866_v12, %v1857_v42  ;;  %v1875_v3 = vmul.f32 %v1867_v58, %v1858_v4 }
 0xb06   :  { %v1876_v18 = vmul.f32 %v1864_v7, %v1859_v37  ;;  %v1877_v56 = vmul.f32 %v1865_v10, %v1860_v53 }
 0xb07   :  { %v1881_v13 = vadd.f32 %v1880_v25, %v1874_v26 }
 0xb08   :  { %v1838_v23 = vpop.f32.mrf.mxu2  ;;  %v1852_v60 = vpop.f32.mrf.mxu3  ;;  %v1885_v27 = vadd.f32 %v1877_v56, %v1876_v18 }
 0xb09   :  { %v1839_v48 = vadd.f32 %v1838_v23, %v1750_v49  ;;  %v1853_v57 = vadd.f32 %v1852_v60, %v1751_v51  ;;  %v1882_v61 = vadd.f32 %v1881_v13, %v1875_v3 }
 0xb0b   :  { %v1861_v6 = vmax.f32 %v1839_v48, 0.0  ;;  %v1862_v62 = vmax.f32 %v1853_v57, 0.0  ;;  %1883 = vadd.xlane.f32.xlu1 %v1882_v61 }
 0xb0d   :  { %v1878_v30 = vmul.f32 %v1866_v12, %v1861_v6  ;;  %v1879_v11 = vmul.f32 %v1867_v58, %v1862_v62 }
 0xb0f   :  { %v1886_v28 = vadd.f32 %v1885_v27, %v1878_v30 }
 0xb11   :  { %v1887_v29 = vadd.f32 %v1886_v28, %v1879_v11 }
 0xb13   :  { %1888 = vadd.xlane.f32.xlu0 %v1887_v29 }
 0xb7e   :  { %v1884_v38 = vpop.xlane.xlu1 %1883 }
 0xb7f   :  { %v1895_v1 = vadd.f32 %v1893_v17, %v1884_v38 }
 0xb81   :  { %v1897_v36 = vsub.f32 0.0, %v1895_v1 }
 0xb83   :  { %v1899_v39 = vmul.f32 1.442695, %v1897_v36 }
 0xb85   :  { %2250 = vpow2.f32 %v1899_v39 }
 0xb86   :  { %v1889_v22 = vpop.xlane.xlu0 %1888 }
 0xb87   :  { %v1896_v2 = vadd.f32 %v1893_v17, %v1889_v22 }
 0xb89   :  { %v1898_v41 = vsub.f32 0.0, %v1896_v2 }
 0xb8b   :  { %v2251_v21 = vpop.eup %2250  ;;  %v1901_v9 = vmul.f32 1.442695, %v1898_v41 }
 0xb8c   :  { %v1903_v63 = vadd.f32 1.0, %v2251_v21 }
 0xb8d   :  { %2252 = vpow2.f32 %v1901_v9 }
 0xb8e   :  { %2254 = vrcp.f32 %v1903_v63 }
 0xb93   :  { %v2253_v5 = vpop.eup %2252 }
 0xb94   :  { %v1904_v20 = vadd.f32 1.0, %v2253_v5  ;;  %v2255_v24 = vpop.eup %2254 }
 0xb95   :  { %v1907_v32 = vmax.f32 %v2255_v24, 0.0 }
 0xb96   :  { %2256 = vrcp.f32 %v1904_v20 }
 0xb97   :  { %v1909_v47 = vmin.f32 %v1907_v32, 1.0 }
 0xb99   :  { %v1915_v43 = vperm.slane %v1909_v47, %v1914_v54 }
 0xb9c   :  { %v2257_v46 = vpop.eup %2256 }
 0xb9d   :  { %v1908_v19 = vmax.f32 %v2257_v46, 0.0 }
 0xb9f   :  { %v1910_v40 = vmin.f32 %v1908_v19, 1.0 }
 0xba1   :  { %v1916_v35 = vperm.slane %v1910_v40, %v1914_v54 }
 0xba3   :  { %v1917_v55 = vsel %vm668_vm1, %v1916_v35, %v1915_v43 }
 0xba4   :  { %1920 = vst.msk [vmem:[#allocation7] sm:$0x3] %vm1919_vm0, %v1917_v55 }
 0xba5   :  { %1931 = dma.vmem_to_hbm [thread:$0]  %s1927_s30, 32, %s1929_s6, [#allocation4]  }
 0xba6   :  { %2334 = dma.done.wait [#allocation4], 32  }
 0xba7   :  { %2335 = vsyncadd [#allocation4], 4294967264 }
 0xba8   :  { %1936 = vsyncpa [#allocation3], 1 }
 0xba9   :  { %1937 = vsyncpa [#allocation6], 1 }
 0xbaa   :  { %1938 = vsyncpa [#allocation4], 1 }

</bundles_post_ra>
